<compile_context>
chip_gen: v7x
topology: tpu7x:2x2x1
jax: 0.10.0
libtpu: 0.0.40
codegen_flags: <defaults>
</compile_context>

<pallas_src>
import jax
import jax.numpy as jnp
from jax import lax
from jax.experimental import pallas as pl
from jax.experimental.pallas import tpu as pltpu
import numpy as np


def _conv_block_kernel(x_ref, w1_ref, b1_ref, w3_ref, b3_ref, wo_ref, bo_ref,
                       o_ref, padw_ref):
    NB, H, W, C = x_ref.shape
    C2 = wo_ref.shape[1]
    Ho = (H - 2) // 2 + 1
    Wo = (W - 5) // 2 + 1
    M = NB * H * W

    x = x_ref[...].astype(jnp.float32)                      # (NB, H, W, C)
    x2d = x.reshape(M, C)

    # --- conv1_in (1x1) + ReLU: one (M, C) @ (C, C) MXU matmul ---
    h1 = jnp.dot(x2d, w1_ref[...], preferred_element_type=jnp.float32) + b1_ref[...]
    h1 = jnp.maximum(h1, 0.0).reshape(NB, H, W, C)

    # --- conv3 (3x3, 'same') ---
    # W-halo scratch: only the two halo columns are zeroed (tiny stores, redone
    # every grid step so the result does not depend on which core ran step 0);
    # the interior is fully overwritten every step.
    zcol = jnp.zeros((NB, H, 1, C), jnp.float32)
    padw_ref[:, :, 0:1, :] = zcol
    padw_ref[:, :, W + 1:W + 2, :] = zcol
    padw_ref[:, :, 1:W + 1, :] = h1

    g_left = padw_ref[:, :, 0:W, :]                         # h1[., ., w-1, .]
    g_right = padw_ref[:, :, 2:W + 2, :]                    # h1[., ., w+1, .]
    # pack the three W-taps along lanes -> K = 3C per matmul
    g = jnp.concatenate([g_left, h1, g_right], axis=-1)     # (NB, H, W, 3C)

    zrow = jnp.zeros((NB, 1, W, 3 * C), jnp.float32)
    g_up = jnp.concatenate([zrow, g[:, :H - 1]], axis=1)    # row h-1 (free leading-dim concat)
    g_dn = jnp.concatenate([g[:, 1:], zrow], axis=1)        # row h+1
    acc = jnp.dot(g_up.reshape(M, 3 * C), w3_ref[0], preferred_element_type=jnp.float32)
    acc = acc + jnp.dot(g.reshape(M, 3 * C), w3_ref[1], preferred_element_type=jnp.float32)
    acc = acc + jnp.dot(g_dn.reshape(M, 3 * C), w3_ref[2], preferred_element_type=jnp.float32)
    h2 = jnp.maximum(acc + b3_ref[...], 0.0)

    # --- residual add, conv1_out (1x1, C -> 2C), outer ReLU ---
    h3 = h2 + x2d
    y = jnp.dot(h3, wo_ref[...], preferred_element_type=jnp.float32) + bo_ref[...]
    y = jnp.maximum(y, 0.0).reshape(NB, H, W, C2)

    # --- MaxPool2d(kernel=(2, 5), stride=(2, 2)) ---
    # H-pair max via one leading-dim reshape (rows 2h / 2h+1 side by side).
    ya = y[:, :2 * Ho].reshape(NB, Ho, 2 * W, C2)
    yh = jnp.maximum(ya[:, :, :W, :], ya[:, :, W:, :])      # (NB, Ho, W, C2)
    # 5-wide W window as 4 shifted VPU maxes (no per-column XLU reductions).
    m = yh[:, :, 0:W - 4, :]
    for d in range(1, 5):
        m = jnp.maximum(m, yh[:, :, d:W - 4 + d, :])        # (NB, Ho, W-4, C2)
    # stride-2 column pick, assembled along lanes -> one lane-dense block store.
    # TODO(synk): for large Wo replace this small Python loop with a reshape-based
    # even-column decimation.
    cols = [m[:, :, 2 * j, :] for j in range(Wo)]           # each (NB, Ho, C2)
    o_ref[...] = jnp.concatenate(cols, axis=-1)             # (NB, Ho, Wo*C2)


def conv2d_block_1x1(x_nchw, params):
    """x_nchw: (N, C, H, W) float32 -> (N, 2C, Ho, Wo) like the PyTorch module."""
    w1, b1, w3, b3, wo, bo = params                         # PyTorch OIHW layouts
    N, C, H, W = x_nchw.shape
    C2 = 2 * C
    Ho = (H - 2) // 2 + 1
    Wo = (W - 5) // 2 + 1

    # 2-way parallel grid (megacore / v7x dual-TC) with the rest of the batch
    # folded into the matmul M dimension.
    # Note: for much larger H/W/C, add an H-tile grid axis (with a 1-row halo)
    # so one block stays well inside v7x's 64 MiB VMEM.
    if N >= 2 and N % 2 == 0:
        grid_n = 2
    else:
        grid_n = max(N, 1)
    NB = N // grid_n

    x = jnp.transpose(x_nchw, (0, 2, 3, 1)).astype(jnp.float32)   # NHWC

    # weights -> matmul layouts; 3x3 taps grouped per kernel row: (3, 3C, C)
    # with column index kw*C + ci.
    w1_k = jnp.transpose(w1[:, :, 0, 0], (1, 0)).astype(jnp.float32)          # (C, C)
    w3_k = jnp.transpose(w3, (2, 3, 1, 0)).reshape(3, 3 * C, C).astype(jnp.float32)
    wo_k = jnp.transpose(wo[:, :, 0, 0], (1, 0)).astype(jnp.float32)          # (C, 2C)
    b1_k = b1.reshape(1, C).astype(jnp.float32)
    b3_k = b3.reshape(1, C).astype(jnp.float32)
    bo_k = bo.reshape(1, C2).astype(jnp.float32)

    out_flat = pl.pallas_call(
        _conv_block_kernel,
        out_shape=jax.ShapeDtypeStruct((N, Ho, Wo * C2), jnp.float32),
        grid_spec=pltpu.PrefetchScalarGridSpec(
            num_scalar_prefetch=0,
            grid=(grid_n,),
            in_specs=[
                pl.BlockSpec((NB, H, W, C), lambda g: (g, 0, 0, 0)),
                # weights/biases: constant index maps -> stay resident, no re-DMA
                pl.BlockSpec((C, C), lambda g: (0, 0)),
                pl.BlockSpec((1, C), lambda g: (0, 0)),
                pl.BlockSpec((3, 3 * C, C), lambda g: (0, 0, 0)),
                pl.BlockSpec((1, C), lambda g: (0, 0)),
                pl.BlockSpec((C, C2), lambda g: (0, 0)),
                pl.BlockSpec((1, C2), lambda g: (0, 0)),
            ],
            out_specs=pl.BlockSpec((NB, Ho, Wo * C2), lambda g: (g, 0, 0)),
            scratch_shapes=[pltpu.VMEM((NB, H, W + 2, C), jnp.float32)],
        ),
        compiler_params=pltpu.CompilerParams(
            dimension_semantics=("parallel",),
            vmem_limit_bytes=32 * 1024 * 1024,
        ),
    )(x, w1_k, b1_k, w3_k, b3_k, wo_k, bo_k)

    # lane-dense slab (N, Ho, Wo*C2) -> (N, Ho, Wo, C2) -> NCHW (N, C2, Ho, Wo)
    return jnp.transpose(out_flat.reshape(N, Ho, Wo, C2), (0, 3, 1, 2))


def ref_forward(x, params):
    """Pure-JAX reference mirroring the PyTorch forward pass (NCHW)."""
    w1, b1, w3, b3, wo, bo = params
    dn = ('NCHW', 'OIHW', 'NCHW')
    hp = lax.Precision.HIGHEST
    h = lax.conv_general_dilated(x, w1, (1, 1), 'SAME', dimension_numbers=dn,
                                 precision=hp) + b1[None, :, None, None]
    h = jnp.maximum(h, 0.0)
    h = lax.conv_general_dilated(h, w3, (1, 1), 'SAME', dimension_numbers=dn,
                                 precision=hp) + b3[None, :, None, None]
    h = jnp.maximum(h, 0.0)
    h = h + x
    h = lax.conv_general_dilated(h, wo, (1, 1), 'SAME', dimension_numbers=dn,
                                 precision=hp) + bo[None, :, None, None]
    h = jnp.maximum(h, 0.0)
    return lax.reduce_window(h, -jnp.inf, lax.max,
                             (1, 1, 2, 5), (1, 1, 2, 2), 'VALID')


if __name__ == "__main__":
    C = 32                      # num_neurons (module default)
    N, H, W = 2, 8, 16          # small NCHW input
    key = jax.random.PRNGKey(0)
    ks = jax.random.split(key, 7)
    scale = 0.1
    x = jax.random.normal(ks[0], (N, C, H, W), jnp.float32)
    w1 = jax.random.normal(ks[1], (C, C, 1, 1), jnp.float32) * scale
    b1 = jax.random.normal(ks[2], (C,), jnp.float32) * scale
    w3 = jax.random.normal(ks[3], (C, C, 3, 3), jnp.float32) * scale
    b3 = jax.random.normal(ks[4], (C,), jnp.float32) * scale
    wo = jax.random.normal(ks[5], (2 * C, C, 1, 1), jnp.float32) * scale
    bo = jax.random.normal(ks[6], (2 * C,), jnp.float32) * scale
    params = (w1, b1, w3, b3, wo, bo)

    out = jax.block_until_ready(conv2d_block_1x1(x, params))
    ref = jax.block_until_ready(ref_forward(x, params))

    assert out.shape == (N, 2 * C, (H - 2) // 2 + 1, (W - 5) // 2 + 1), out.shape
    np.testing.assert_allclose(np.asarray(out), np.asarray(ref),
                               rtol=2e-4, atol=2e-4)
    print("KERNEL_OK")
</pallas_src>

<mosaic_0001>
module attributes {stable_mosaic.version = 11 : i64} {
  func.func @_conv_block_kernel(%arg0: i32, %arg1: memref<1x8x16x32xf32, #tpu.memory_space<vmem>>, %arg2: memref<32x32xf32, #tpu.memory_space<vmem>>, %arg3: memref<1x32xf32, #tpu.memory_space<vmem>>, %arg4: memref<3x96x32xf32, #tpu.memory_space<vmem>>, %arg5: memref<1x32xf32, #tpu.memory_space<vmem>>, %arg6: memref<32x64xf32, #tpu.memory_space<vmem>>, %arg7: memref<1x64xf32, #tpu.memory_space<vmem>>, %arg8: memref<1x4x384xf32, #tpu.memory_space<vmem>>, %arg9: memref<1x8x18x32xf32, #tpu.memory_space<vmem>>) attributes {dimension_semantics = [#tpu.dimension_semantics<parallel>], iteration_bounds = array<i64: 2>, scalar_prefetch = 0 : i64, scratch_operands = 1 : i64, tpu.core_type = #tpu.core_type<tc>, window_params = [{transform_indices = @transform_0, window_bounds = array<i64: 1, 8, 16, 32>}, {pipeline_mode = #tpu.pipeline_mode<synchronous>, transform_indices = @transform_1, window_bounds = array<i64: 32, 32>}, {pipeline_mode = #tpu.pipeline_mode<synchronous>, transform_indices = @transform_2, window_bounds = array<i64: 1, 32>}, {pipeline_mode = #tpu.pipeline_mode<synchronous>, transform_indices = @transform_3, window_bounds = array<i64: 3, 96, 32>}, {pipeline_mode = #tpu.pipeline_mode<synchronous>, transform_indices = @transform_4, window_bounds = array<i64: 1, 32>}, {pipeline_mode = #tpu.pipeline_mode<synchronous>, transform_indices = @transform_5, window_bounds = array<i64: 32, 64>}, {pipeline_mode = #tpu.pipeline_mode<synchronous>, transform_indices = @transform_6, window_bounds = array<i64: 1, 64>}, {transform_indices = @transform_7, window_bounds = array<i64: 1, 4, 384>}]} {
    %c0 = arith.constant 0 : index
    %c0_0 = arith.constant 0 : index
    %c0_1 = arith.constant 0 : index
    %c0_2 = arith.constant 0 : index
    %0 = vector.load %arg1[%c0, %c0_0, %c0_1, %c0_2] : memref<1x8x16x32xf32, #tpu.memory_space<vmem>>, vector<1x8x16x32xf32>
    %1 = vector.shape_cast %0 : vector<1x8x16x32xf32> to vector<128x32xf32>
    %c0_3 = arith.constant 0 : index
    %c0_4 = arith.constant 0 : index
    %2 = vector.load %arg2[%c0_3, %c0_4] : memref<32x32xf32, #tpu.memory_space<vmem>>, vector<32x32xf32>
    %cst = arith.constant dense<0.000000e+00> : vector<128x32xf32>
    %3 = tpu.matmul %1, %2, %cst {dimension_numbers = #tpu.dot_dimension_numbers<[1], [0], [0], [1], [0, 0, 1, 1], [], []>} : vector<128x32xf32>, vector<32x32xf32>, vector<128x32xf32> -> vector<128x32xf32>
    %c0_5 = arith.constant 0 : index
    %c0_6 = arith.constant 0 : index
    %4 = vector.load %arg3[%c0_5, %c0_6] : memref<1x32xf32, #tpu.memory_space<vmem>>, vector<1x32xf32>
    %5 = vector.broadcast %4 : vector<1x32xf32> to vector<128x32xf32>
    %6 = arith.addf %3, %5 : vector<128x32xf32>
    %cst_7 = arith.constant 0.000000e+00 : f32
    %7 = vector.broadcast %cst_7 : f32 to vector<128x32xf32>
    %8 = arith.maximumf %6, %7 : vector<128x32xf32>
    %9 = vector.shape_cast %8 : vector<128x32xf32> to vector<1x8x16x32xf32>
    %cst_8 = arith.constant 0.000000e+00 : f32
    %10 = vector.broadcast %cst_8 : f32 to vector<1x8x1x32xf32>
    %c0_9 = arith.constant 0 : index
    %c0_10 = arith.constant 0 : index
    %c0_11 = arith.constant 0 : index
    %c0_12 = arith.constant 0 : index
    %11 = vector.load %arg9[%c0_9, %c0_10, %c0_11, %c0_12] : memref<1x8x18x32xf32, #tpu.memory_space<vmem>>, vector<1x8x1x32xf32>
    tpu.vector_store %arg9[%c0_9, %c0_10, %c0_11, %c0_12], %10 {strides = array<i32>} : memref<1x8x18x32xf32, #tpu.memory_space<vmem>>, vector<1x8x1x32xf32>,
    %c0_13 = arith.constant 0 : index
    %c0_14 = arith.constant 0 : index
    %c17 = arith.constant 17 : index
    %c0_15 = arith.constant 0 : index
    %12 = vector.load %arg9[%c0_13, %c0_14, %c17, %c0_15] : memref<1x8x18x32xf32, #tpu.memory_space<vmem>>, vector<1x8x1x32xf32>
    tpu.vector_store %arg9[%c0_13, %c0_14, %c17, %c0_15], %10 {strides = array<i32>} : memref<1x8x18x32xf32, #tpu.memory_space<vmem>>, vector<1x8x1x32xf32>,
    %c0_16 = arith.constant 0 : index
    %c0_17 = arith.constant 0 : index
    %c1 = arith.constant 1 : index
    %c0_18 = arith.constant 0 : index
    %13 = vector.load %arg9[%c0_16, %c0_17, %c1, %c0_18] : memref<1x8x18x32xf32, #tpu.memory_space<vmem>>, vector<1x8x16x32xf32>
    tpu.vector_store %arg9[%c0_16, %c0_17, %c1, %c0_18], %9 {strides = array<i32>} : memref<1x8x18x32xf32, #tpu.memory_space<vmem>>, vector<1x8x16x32xf32>,
    %c0_19 = arith.constant 0 : index
    %c0_20 = arith.constant 0 : index
    %c0_21 = arith.constant 0 : index
    %c0_22 = arith.constant 0 : index
    %14 = vector.load %arg9[%c0_19, %c0_20, %c0_21, %c0_22] : memref<1x8x18x32xf32, #tpu.memory_space<vmem>>, vector<1x8x16x32xf32>
    %c0_23 = arith.constant 0 : index
    %c0_24 = arith.constant 0 : index
    %c2 = arith.constant 2 : index
    %c0_25 = arith.constant 0 : index
    %15 = vector.load %arg9[%c0_23, %c0_24, %c2, %c0_25] : memref<1x8x18x32xf32, #tpu.memory_space<vmem>>, vector<1x8x16x32xf32>
    %16 = tpu.concatenate %14, %9, %15 in 3 : vector<1x8x16x32xf32>, vector<1x8x16x32xf32>, vector<1x8x16x32xf32> -> vector<1x8x16x96xf32>
    %cst_26 = arith.constant 0.000000e+00 : f32
    %17 = vector.broadcast %cst_26 : f32 to vector<1x1x16x96xf32>
    %18 = vector.extract_strided_slice %16 {offsets = [0, 0, 0, 0], sizes = [1, 7, 16, 96], strides = [1, 1, 1, 1]} : vector<1x8x16x96xf32> to vector<1x7x16x96xf32>
    %19 = tpu.concatenate %17, %18 in 1 : vector<1x1x16x96xf32>, vector<1x7x16x96xf32> -> vector<1x8x16x96xf32>
    %20 = vector.extract_strided_slice %16 {offsets = [0, 1, 0, 0], sizes = [1, 7, 16, 96], strides = [1, 1, 1, 1]} : vector<1x8x16x96xf32> to vector<1x7x16x96xf32>
    %21 = tpu.concatenate %20, %17 in 1 : vector<1x7x16x96xf32>, vector<1x1x16x96xf32> -> vector<1x8x16x96xf32>
    %22 = vector.shape_cast %19 : vector<1x8x16x96xf32> to vector<128x96xf32>
    %c0_27 = arith.constant 0 : index
    %c0_28 = arith.constant 0 : index
    %c0_29 = arith.constant 0 : index
    %23 = vector.load %arg4[%c0_27, %c0_28, %c0_29] : memref<3x96x32xf32, #tpu.memory_space<vmem>>, vector<1x96x32xf32>
    %24 = vector.shape_cast %23 : vector<1x96x32xf32> to vector<96x32xf32>
    %cst_30 = arith.constant dense<0.000000e+00> : vector<128x32xf32>
    %25 = tpu.matmul %22, %24, %cst_30 {dimension_numbers = #tpu.dot_dimension_numbers<[1], [0], [0], [1], [0, 0, 1, 1], [], []>} : vector<128x96xf32>, vector<96x32xf32>, vector<128x32xf32> -> vector<128x32xf32>
    %26 = vector.shape_cast %16 : vector<1x8x16x96xf32> to vector<128x96xf32>
    %c1_31 = arith.constant 1 : index
    %c0_32 = arith.constant 0 : index
    %c0_33 = arith.constant 0 : index
    %27 = vector.load %arg4[%c1_31, %c0_32, %c0_33] : memref<3x96x32xf32, #tpu.memory_space<vmem>>, vector<1x96x32xf32>
    %28 = vector.shape_cast %27 : vector<1x96x32xf32> to vector<96x32xf32>
    %cst_34 = arith.constant dense<0.000000e+00> : vector<128x32xf32>
    %29 = tpu.matmul %26, %28, %cst_34 {dimension_numbers = #tpu.dot_dimension_numbers<[1], [0], [0], [1], [0, 0, 1, 1], [], []>} : vector<128x96xf32>, vector<96x32xf32>, vector<128x32xf32> -> vector<128x32xf32>
    %30 = arith.addf %25, %29 : vector<128x32xf32>
    %31 = vector.shape_cast %21 : vector<1x8x16x96xf32> to vector<128x96xf32>
    %c2_35 = arith.constant 2 : index
    %c0_36 = arith.constant 0 : index
    %c0_37 = arith.constant 0 : index
    %32 = vector.load %arg4[%c2_35, %c0_36, %c0_37] : memref<3x96x32xf32, #tpu.memory_space<vmem>>, vector<1x96x32xf32>
    %33 = vector.shape_cast %32 : vector<1x96x32xf32> to vector<96x32xf32>
    %cst_38 = arith.constant dense<0.000000e+00> : vector<128x32xf32>
    %34 = tpu.matmul %31, %33, %cst_38 {dimension_numbers = #tpu.dot_dimension_numbers<[1], [0], [0], [1], [0, 0, 1, 1], [], []>} : vector<128x96xf32>, vector<96x32xf32>, vector<128x32xf32> -> vector<128x32xf32>
    %35 = arith.addf %30, %34 : vector<128x32xf32>
    %c0_39 = arith.constant 0 : index
    %c0_40 = arith.constant 0 : index
    %36 = vector.load %arg5[%c0_39, %c0_40] : memref<1x32xf32, #tpu.memory_space<vmem>>, vector<1x32xf32>
    %37 = vector.broadcast %36 : vector<1x32xf32> to vector<128x32xf32>
    %38 = arith.addf %35, %37 : vector<128x32xf32>
    %cst_41 = arith.constant 0.000000e+00 : f32
    %39 = vector.broadcast %cst_41 : f32 to vector<128x32xf32>
    %40 = arith.maximumf %38, %39 : vector<128x32xf32>
    %41 = arith.addf %40, %1 : vector<128x32xf32>
    %c0_42 = arith.constant 0 : index
    %c0_43 = arith.constant 0 : index
    %42 = vector.load %arg6[%c0_42, %c0_43] : memref<32x64xf32, #tpu.memory_space<vmem>>, vector<32x64xf32>
    %cst_44 = arith.constant dense<0.000000e+00> : vector<128x64xf32>
    %43 = tpu.matmul %41, %42, %cst_44 {dimension_numbers = #tpu.dot_dimension_numbers<[1], [0], [0], [1], [0, 0, 1, 1], [], []>} : vector<128x32xf32>, vector<32x64xf32>, vector<128x64xf32> -> vector<128x64xf32>
    %c0_45 = arith.constant 0 : index
    %c0_46 = arith.constant 0 : index
    %44 = vector.load %arg7[%c0_45, %c0_46] : memref<1x64xf32, #tpu.memory_space<vmem>>, vector<1x64xf32>
    %45 = vector.broadcast %44 : vector<1x64xf32> to vector<128x64xf32>
    %46 = arith.addf %43, %45 : vector<128x64xf32>
    %cst_47 = arith.constant 0.000000e+00 : f32
    %47 = vector.broadcast %cst_47 : f32 to vector<128x64xf32>
    %48 = arith.maximumf %46, %47 : vector<128x64xf32>
    %49 = vector.shape_cast %48 : vector<128x64xf32> to vector<1x8x16x64xf32>
    %50 = vector.shape_cast %49 : vector<1x8x16x64xf32> to vector<1x4x32x64xf32>
    %51 = vector.extract_strided_slice %50 {offsets = [0, 0, 0, 0], sizes = [1, 4, 16, 64], strides = [1, 1, 1, 1]} : vector<1x4x32x64xf32> to vector<1x4x16x64xf32>
    %52 = vector.extract_strided_slice %50 {offsets = [0, 0, 16, 0], sizes = [1, 4, 16, 64], strides = [1, 1, 1, 1]} : vector<1x4x32x64xf32> to vector<1x4x16x64xf32>
    %53 = arith.maximumf %51, %52 : vector<1x4x16x64xf32>
    %54 = vector.extract_strided_slice %53 {offsets = [0, 0, 0, 0], sizes = [1, 4, 12, 64], strides = [1, 1, 1, 1]} : vector<1x4x16x64xf32> to vector<1x4x12x64xf32>
    %55 = vector.extract_strided_slice %53 {offsets = [0, 0, 1, 0], sizes = [1, 4, 12, 64], strides = [1, 1, 1, 1]} : vector<1x4x16x64xf32> to vector<1x4x12x64xf32>
    %56 = arith.maximumf %54, %55 : vector<1x4x12x64xf32>
    %57 = vector.extract_strided_slice %53 {offsets = [0, 0, 2, 0], sizes = [1, 4, 12, 64], strides = [1, 1, 1, 1]} : vector<1x4x16x64xf32> to vector<1x4x12x64xf32>
    %58 = arith.maximumf %56, %57 : vector<1x4x12x64xf32>
    %59 = vector.extract_strided_slice %53 {offsets = [0, 0, 3, 0], sizes = [1, 4, 12, 64], strides = [1, 1, 1, 1]} : vector<1x4x16x64xf32> to vector<1x4x12x64xf32>
    %60 = arith.maximumf %58, %59 : vector<1x4x12x64xf32>
    %61 = vector.extract_strided_slice %53 {offsets = [0, 0, 4, 0], sizes = [1, 4, 12, 64], strides = [1, 1, 1, 1]} : vector<1x4x16x64xf32> to vector<1x4x12x64xf32>
    %62 = arith.maximumf %60, %61 : vector<1x4x12x64xf32>
    %63 = vector.extract_strided_slice %62 {offsets = [0, 0, 0, 0], sizes = [1, 4, 1, 64], strides = [1, 1, 1, 1]} : vector<1x4x12x64xf32> to vector<1x4x1x64xf32>
    %64 = vector.shape_cast %63 : vector<1x4x1x64xf32> to vector<1x4x64xf32>
    %65 = vector.extract_strided_slice %62 {offsets = [0, 0, 2, 0], sizes = [1, 4, 1, 64], strides = [1, 1, 1, 1]} : vector<1x4x12x64xf32> to vector<1x4x1x64xf32>
    %66 = vector.shape_cast %65 : vector<1x4x1x64xf32> to vector<1x4x64xf32>
    %67 = vector.extract_strided_slice %62 {offsets = [0, 0, 4, 0], sizes = [1, 4, 1, 64], strides = [1, 1, 1, 1]} : vector<1x4x12x64xf32> to vector<1x4x1x64xf32>
    %68 = vector.shape_cast %67 : vector<1x4x1x64xf32> to vector<1x4x64xf32>
    %69 = vector.extract_strided_slice %62 {offsets = [0, 0, 6, 0], sizes = [1, 4, 1, 64], strides = [1, 1, 1, 1]} : vector<1x4x12x64xf32> to vector<1x4x1x64xf32>
    %70 = vector.shape_cast %69 : vector<1x4x1x64xf32> to vector<1x4x64xf32>
    %71 = vector.extract_strided_slice %62 {offsets = [0, 0, 8, 0], sizes = [1, 4, 1, 64], strides = [1, 1, 1, 1]} : vector<1x4x12x64xf32> to vector<1x4x1x64xf32>
    %72 = vector.shape_cast %71 : vector<1x4x1x64xf32> to vector<1x4x64xf32>
    %73 = vector.extract_strided_slice %62 {offsets = [0, 0, 10, 0], sizes = [1, 4, 1, 64], strides = [1, 1, 1, 1]} : vector<1x4x12x64xf32> to vector<1x4x1x64xf32>
    %74 = vector.shape_cast %73 : vector<1x4x1x64xf32> to vector<1x4x64xf32>
    %75 = tpu.concatenate %64, %66, %68, %70, %72, %74 in 2 : vector<1x4x64xf32>, vector<1x4x64xf32>, vector<1x4x64xf32>, vector<1x4x64xf32>, vector<1x4x64xf32>, vector<1x4x64xf32> -> vector<1x4x384xf32>
    %c0_48 = arith.constant 0 : index
    %c0_49 = arith.constant 0 : index
    %c0_50 = arith.constant 0 : index
    %76 = vector.load %arg8[%c0_48, %c0_49, %c0_50] : memref<1x4x384xf32, #tpu.memory_space<vmem>>, vector<1x4x384xf32>
    tpu.vector_store %arg8[%c0_48, %c0_49, %c0_50], %75 {strides = array<i32>} : memref<1x4x384xf32, #tpu.memory_space<vmem>>, vector<1x4x384xf32>,
    return
  }
  func.func @transform_0(%arg0: i32) -> (i32, i32, i32, i32) {
    %c0_i32 = arith.constant 0 : i32
    %c0_i32_0 = arith.constant 0 : i32
    %c0_i32_1 = arith.constant 0 : i32
    %c0_i32_2 = arith.constant 0 : i32
    return %arg0, %c0_i32, %c0_i32_0, %c0_i32_1 : i32, i32, i32, i32
  }
  func.func @transform_1(%arg0: i32) -> (i32, i32) {
    %c0_i32 = arith.constant 0 : i32
    %c0_i32_0 = arith.constant 0 : i32
    %c0_i32_1 = arith.constant 0 : i32
    return %c0_i32, %c0_i32_0 : i32, i32
  }
  func.func @transform_2(%arg0: i32) -> (i32, i32) {
    %c0_i32 = arith.constant 0 : i32
    %c0_i32_0 = arith.constant 0 : i32
    %c0_i32_1 = arith.constant 0 : i32
    return %c0_i32, %c0_i32_0 : i32, i32
  }
  func.func @transform_3(%arg0: i32) -> (i32, i32, i32) {
    %c0_i32 = arith.constant 0 : i32
    %c0_i32_0 = arith.constant 0 : i32
    %c0_i32_1 = arith.constant 0 : i32
    %c0_i32_2 = arith.constant 0 : i32
    return %c0_i32, %c0_i32_0, %c0_i32_1 : i32, i32, i32
  }
  func.func @transform_4(%arg0: i32) -> (i32, i32) {
    %c0_i32 = arith.constant 0 : i32
    %c0_i32_0 = arith.constant 0 : i32
    %c0_i32_1 = arith.constant 0 : i32
    return %c0_i32, %c0_i32_0 : i32, i32
  }
  func.func @transform_5(%arg0: i32) -> (i32, i32) {
    %c0_i32 = arith.constant 0 : i32
    %c0_i32_0 = arith.constant 0 : i32
    %c0_i32_1 = arith.constant 0 : i32
    return %c0_i32, %c0_i32_0 : i32, i32
  }
  func.func @transform_6(%arg0: i32) -> (i32, i32) {
    %c0_i32 = arith.constant 0 : i32
    %c0_i32_0 = arith.constant 0 : i32
    %c0_i32_1 = arith.constant 0 : i32
    return %c0_i32, %c0_i32_0 : i32, i32
  }
  func.func @transform_7(%arg0: i32) -> (i32, i32, i32) {
    %c0_i32 = arith.constant 0 : i32
    %c0_i32_0 = arith.constant 0 : i32
    %c0_i32_1 = arith.constant 0 : i32
    return %arg0, %c0_i32, %c0_i32_0 : i32, i32, i32
  }
}

</mosaic_0001>

<bundles_post_ra>
// kernel: tpu_custom_call.1
= control target key start
LH: loop header
LB: loop body
LE: loop exit
PB: predicated region body
PF: predicated region fallthrough
CT: control target
= control target key end

     0   :  { %12 = vsyncpa [#allocation4], 0  ;;  %s3260_s0 = inlined_call_operand.vmem [shape: f32[2,8,16,32], index: 0, kind: input, shape index: {}]   ;;  %s3261_s1 = inlined_call_operand.vmem [shape: f32[32,32], index: 1, kind: input, shape index: {}]   ;;  %s3262_s2 = inlined_call_operand.vmem [shape: f32[1,32], index: 2, kind: input, shape index: {}]   ;;  %s3263_s3 = inlined_call_operand.vmem [shape: f32[3,96,32], index: 3, kind: input, shape index: {}]   ;;  %s3264_s4 = inlined_call_operand.vmem [shape: f32[1,32], index: 4, kind: input, shape index: {}]   ;;  %s3265_s5 = inlined_call_operand.vmem [shape: f32[32,64], index: 5, kind: input, shape index: {}]   ;;  %s3266_s6 = inlined_call_operand.vmem [shape: f32[1,64], index: 6, kind: input, shape index: {}]   ;;  %s3267_s7 = inlined_call_operand.hbm [shape: f32[2,4,384], index: 7, kind: output, shape index: {}]  }
   0x1   :  { %14 = vsyncpa [#allocation4 + $0x1], 0  ;;  %s2561_s24 = smov 0   ;;  %s2563_s25 = smov 0  }
   0x2   :  { %s2565_s26 = smov 0   ;;  %s2567_s27 = smov 0  }
   0x3 LB: > { %s2582_s28 = sadd.s32 4294967295, %s2515_s27   ;;  %s1832_s29 = sadd.s32 4294967294, %s2515_s27   ;;  %s2515_s27 = sphi %s2567_s27, %s3273_s27   ;;  %s2511_s26 = sphi %s2565_s26, %s3272_s26   ;;  %s2507_s25 = sphi %s2563_s25, %s3271_s25   ;;  %s2503_s24 = sphi %s2561_s24, %s3270_s24  }
   0x4   : > { %s2586_s30 = sadd.s32 1, %s2515_s27   ;;  %s179_s8 = sadd.s32 1, %s2511_s26 }
   0x5   : > { %s176_s9 = ssub.s32 %s2515_s27, %s2586_s30  ;;  %p189_p0 = scmp.ne.s32.totalorder %s2511_s26, %s2507_s25 }
   0x6   : > { %p177_p1 = scmp.eq.s32.totalorder %s176_s9, 0  ;;  %p190_p2 = scmp.eq.s32.totalorder %s2582_s28, 1 }
   0x7   : > { %p195_p3 = scmp.ne.s32.totalorder %s2507_s25, %s2503_s24  ;;  %p196_p4 = scmp.eq.s32.totalorder %s1832_s29, 1 }
   0x8   : > { %s2597_s10 = scalar_select %p177_p1, %s2511_s26, %s179_s8  }
   0x9   : > { %p2599_p5 = por %p190_p2, %p189_p0  ;;  %p2603_p6 = por %p196_p4, %p195_p3 }
   0xa   : > { %p1835_p7 = scmp.ge.s32.totalorder %s2515_s27, 1  ;;  %p240_p8 = scmp.lt.s32.totalorder %s2515_s27, 3 }
   0xc   : > { %p241_p9 = pnand %p1835_p7, %p240_p8 }
   0xd   : > { %v293_v0 = vld [vmem:[%s3261_s1] sm:$0xff] (!%p241_p9)  ;;  %v294_v1 = vld [vmem:[%s3261_s1 + $0x8] sm:$0xff] (!%p241_p9)  ;;  %v295_v2 = vld [vmem:[%s3261_s1 + $0x10] sm:$0xff] (!%p241_p9)  ;;  %p272_p10 = scmp.lt.s32.totalorder (!%p241_p9), %s2582_s28, 1  ;;  %vm304_vm0 = vcmask (!%p241_p9), 261120   ;;  %vm514_vm1 = vcmask (!%p241_p9), 253952  }
   0xe   : > { %244 = sbr.rel (%p241_p9) target bundleno = 1050 (0x41a), region = 48  ;;  %v2277_v3 = vpack.c.bf16 (!%p241_p9), %v294_v1, %v293_v0  ;;  %v296_v4 = vld [vmem:[%s3261_s1 + $0x18] sm:$0xff] (!%p241_p9)  ;;  %v2517_v22 = vmov (!%p241_p9), 0.0   ;;  %v1855_v23 = vld [vmem:[%s3263_s3 + $0x60] sm:$0xff] (!%p241_p9)  ;;  %v1856_v24 = vld [vmem:[%s3263_s3 + $0x68] sm:$0xff] (!%p241_p9)  ;;  %s2518_s16 = smov (!%p241_p9), 32  }
   0xf   : > { %v2281_v5 = vpack.c.bf16 (!%p241_p9), %v296_v4, %v295_v2  ;;  %523 = vst.msk [vmem:[#allocation2 + $0x11] sm:$0x1] (!%p241_p9), %vm514_vm1, %v2517_v22  ;;  %515 = vst.msk [vmem:[#allocation2] sm:$0x1] (!%p241_p9), %vm514_vm1, %v2517_v22  ;;  %v1897_v25 = vld [vmem:[%s3263_s3 + $0xc0] sm:$0xff] (!%p241_p9)  ;;  %v2285_v26 = vpack.c.bf16 (!%p241_p9), %v1856_v24, %v1855_v23  ;;  %v1898_v27 = vld [vmem:[%s3263_s3 + $0xc8] sm:$0xff] (!%p241_p9) }
  0x10   : > { %2278 = vmatprep.subr.bf16.mxu0 (!%p241_p9), %v2277_v3  ;;  %516 = vst.msk [vmem:[#allocation2 + $0x18] sm:$0x1] (!%p241_p9), %vm514_vm1, %v2517_v22  ;;  %517 = vst.msk [vmem:[#allocation2 + $0x30] sm:$0x1] (!%p241_p9), %vm514_vm1, %v2517_v22  ;;  %v1857_v28 = vld [vmem:[%s3263_s3 + $0x70] sm:$0xff] (!%p241_p9)  ;;  %v1858_v29 = vld [vmem:[%s3263_s3 + $0x78] sm:$0xff] (!%p241_p9)  ;;  %v2758_v30 = vpack.c.bf16 (!%p241_p9), %v1898_v27, %v1897_v25 }
  0x11   : > { %2280 = vmatpush3.bf16.msra.mxu0 (!%p241_p9), %v2277_v3  ;;  %518 = vst.msk [vmem:[#allocation2 + $0x48] sm:$0x1] (!%p241_p9), %vm514_vm1, %v2517_v22  ;;  %519 = vst.msk [vmem:[#allocation2 + $0x60] sm:$0x1] (!%p241_p9), %vm514_vm1, %v2517_v22  ;;  %v2289_v31 = vpack.c.bf16 (!%p241_p9), %v1858_v29, %v1857_v28  ;;  %2286 = vmatprep.subr.bf16.mxu1 (!%p241_p9), %v2285_v26  ;;  %v1899_v32 = vld [vmem:[%s3263_s3 + $0xd0] sm:$0xff] (!%p241_p9)  ;;  %v1900_v33 = vld [vmem:[%s3263_s3 + $0xd8] sm:$0xff] (!%p241_p9) }
  0x12   : > { %2282 = vmatprep.subr.bf16.mxu0 (!%p241_p9), %v2281_v5  ;;  %520 = vst.msk [vmem:[#allocation2 + $0x78] sm:$0x1] (!%p241_p9), %vm514_vm1, %v2517_v22  ;;  %521 = vst.msk [vmem:[#allocation2 + $0x90] sm:$0x1] (!%p241_p9), %vm514_vm1, %v2517_v22  ;;  %2288 = vmatpush3.bf16.msra.mxu1 (!%p241_p9), %v2285_v26  ;;  %v2768_v34 = vpack.c.bf16 (!%p241_p9), %v1900_v33, %v1899_v32  ;;  %v1859_v35 = vld [vmem:[%s3263_s3 + $0x80] sm:$0xff] (!%p241_p9)  ;;  %v1860_v36 = vld [vmem:[%s3263_s3 + $0x88] sm:$0xff] (!%p241_p9) }
  0x13   : > { %522 = vst.msk [vmem:[#allocation2 + $0xa8] sm:$0x1] (!%p241_p9), %vm514_vm1, %v2517_v22  ;;  %524 = vst.msk [vmem:[#allocation2 + $0x29] sm:$0x1] (!%p241_p9), %vm514_vm1, %v2517_v22  ;;  %2290 = vmatprep.subr.bf16.mxu1 (!%p241_p9), %v2289_v31  ;;  %v2293_v37 = vpack.c.bf16 (!%p241_p9), %v1860_v36, %v1859_v35  ;;  %v1901_v38 = vld [vmem:[%s3263_s3 + $0xe0] sm:$0xff] (!%p241_p9)  ;;  %v1902_v39 = vld [vmem:[%s3263_s3 + $0xe8] sm:$0xff] (!%p241_p9) }
  0x14   : > { %525 = vst.msk [vmem:[#allocation2 + $0x41] sm:$0x1] (!%p241_p9), %vm514_vm1, %v2517_v22  ;;  %526 = vst.msk [vmem:[#allocation2 + $0x59] sm:$0x1] (!%p241_p9), %vm514_vm1, %v2517_v22  ;;  %v2784_v40 = vpack.c.bf16 (!%p241_p9), %v1902_v39, %v1901_v38  ;;  %v1861_v41 = vld [vmem:[%s3263_s3 + $0x90] sm:$0xff] (!%p241_p9)  ;;  %v1862_v42 = vld [vmem:[%s3263_s3 + $0x98] sm:$0xff] (!%p241_p9) }
  0x15   : > { %s273_s21 = scalar_select %p272_p10, %s2582_s28, 1  ;;  %2284 = vmatpush3.bf16.msra.mxu0 %v2281_v5  ;;  %527 = vst.msk [vmem:[#allocation2 + $0x71] sm:$0x1] %vm514_vm1, %v2517_v22  ;;  %528 = vst.msk [vmem:[#allocation2 + $0x89] sm:$0x1] %vm514_vm1, %v2517_v22  ;;  %v2297_v43 = vpack.c.bf16 %v1862_v42, %v1861_v41  ;;  %v1903_v45 = vld [vmem:[%s3263_s3 + $0xf0] sm:$0xff] }
  0x16   : > { %529 = vst.msk [vmem:[#allocation2 + $0xa1] sm:$0x1] %vm514_vm1, %v2517_v22  ;;  %530 = vst.msk [vmem:[#allocation2 + $0xb9] sm:$0x1] %vm514_vm1, %v2517_v22  ;;  %2334 = vmatprep.subr.bf16.mxu0 %v2758_v30  ;;  %2292 = vmatpush3.bf16.msra.mxu1 %v2289_v31  ;;  %v2796_v44 = vld [vmem:[%s3262_s2] ss:$0 sm:$0xff] }
  0x17   : > { %s1944_s22 = sshll.u32 %s273_s21, 7  ;;  %2294 = vmatprep.subr.bf16.mxu1 %v2293_v37  ;;  %v1904_v46 = vld [vmem:[%s3263_s3 + $0xf8] sm:$0xff]  ;;  %v1863_v48 = vld [vmem:[%s3263_s3 + $0xa0] sm:$0xff]  ;;  %v1864_v49 = vld [vmem:[%s3263_s3 + $0xa8] sm:$0xff]  ;;  %s2519_s21 = smov 64   ;;  %vm723_vm2 = vcmask 523264  }
  0x18   : > { %s2626_s8 = scalar_lea.vmem %s3260_s0, %s1944_s22  ;;  %v2805_v47 = vpack.c.bf16 %v1904_v46, %v1903_v45  ;;  %v2301_v51 = vpack.c.bf16 %v1864_v49, %v1863_v48  ;;  %v1905_v55 = vld [vmem:[%s3263_s3 + $0x100] sm:$0xff]  ;;  %v1906_v56 = vld [vmem:[%s3263_s3 + $0x108] sm:$0xff]  ;;  %v1865_v59 = vld [vmem:[%s3263_s3 + $0xb0] sm:$0xff]  ;;  %vm765_vm3 = vcmask 785408   ;;  %vm1572_vm4 = vcmask 1046528   ;;  %s269_s18 = sand.u32 1, %s2507_s25  }
  0x19   : > { %v2629_v6 = vld [vmem:[%s2626_s8] sm:$0xff]  ;;  %v2634_v7 = vld [vmem:[%s2626_s8 + $0x8] sm:$0xff]  ;;  %v2637_v8 = vld [vmem:[%s2626_s8 + $0x10] sm:$0xff]  ;;  %v2823_v58 = vpack.c.bf16 %v1906_v56, %v1905_v55  ;;  %vm1601_vm5 = vcmask 1045504   ;;  %vm1630_vm6 = vcmask 1044480   ;;  %vm1659_vm7 = vcmask 1043456  }
  0x1a   : > { %2077 = vmatprep.mubr.msk.f32.mxu0 %vm304_vm0, %v2629_v6  ;;  %v2644_v9 = vld [vmem:[%s2626_s8 + $0x18] sm:$0xff]  ;;  %v2647_v10 = vld [vmem:[%s2626_s8 + $0x20] sm:$0xff]  ;;  %v2654_v11 = vld [vmem:[%s2626_s8 + $0x28] sm:$0xff]  ;;  %2296 = vmatpush3.bf16.msra.mxu1 %v2293_v37  ;;  %vm1693_vm8 = vcmask 1041409   ;;  %vm1696_vm9 = vcmask 1042434   ;;  %vm1699_vm10 = vcmask 1043459  }
  0x1b   : > { %2078 = vmatmul.mubr.msk.f32.vlgmr.msra.gmra.mrb[0].mxu0 %vm304_vm0, %v2634_v7  ;;  %v2657_v12 = vld [vmem:[%s2626_s8 + $0x30] sm:$0xff]  ;;  %v2664_v13 = vld [vmem:[%s2626_s8 + $0x38] sm:$0xff]  ;;  %v2667_v14 = vld [vmem:[%s2626_s8 + $0x40] sm:$0xff]  ;;  %2298 = vmatprep.subr.bf16.mxu1 %v2297_v43  ;;  %s2409_s19 = smul.u32 12, %s269_s18  ;;  %s2520_s13 = smov [#allocation3]  }
  0x1c   : > { %2080 = vmatprep.mubr.msk.f32.mxu0 %vm304_vm0, %v2637_v8  ;;  %v2674_v15 = vld [vmem:[%s2626_s8 + $0x48] sm:$0xff]  ;;  %v2677_v16 = vld [vmem:[%s2626_s8 + $0x50] sm:$0xff]  ;;  %v2684_v17 = vld [vmem:[%s2626_s8 + $0x58] sm:$0xff]  ;;  %2336 = vmatpush3.bf16.msra.mxu0 %v2758_v30  ;;  %s2410_s20 = smul.u32 192, %s2582_s28  ;;  %s1759_s28 = scalar_lea.sflag [#allocation4], %s269_s18 }
  0x1d   : > { %v2687_v18 = vld [vmem:[%s2626_s8 + $0x60] sm:$0xff]  ;;  %v2694_v19 = vld [vmem:[%s2626_s8 + $0x68] sm:$0xff]  ;;  %v2697_v20 = vld [vmem:[%s2626_s8 + $0x70] sm:$0xff]  ;;  %2338 = vmatprep.subr.bf16.mxu0 %v2768_v34  ;;  %s271_s22 = scalar_lea.vmem [#allocation3], %s2409_s19  ;;  %s2457_s14 = sshll.u32 %s2520_s13, 4  ;;  %s2458_s14 = int_to_ptr.vmem [resolvable:$false] %s2457_s14 }
  0x1e   : > { %v2704_v21 = vld [vmem:[%s2626_s8 + $0x78] sm:$0xff]  ;;  %2300 = vmatpush3.bf16.msra.mxu1 %v2297_v43  ;;  %v1907_v3 = vld [vmem:[%s3263_s3 + $0x110] sm:$0xff]  ;;  %s1773_s23 = sshll.u32 %s271_s22, 4  ;;  %s3217_s9 = scalar_lea.hbm %s3267_s7, %s2410_s20  ;;  %s3219_s23 = int_to_ptr.vmem [resolvable:$true] %s1773_s23 }
  0x1f   : > { %2081 = vmatmul.mubr.msk.f32.gmra.mrb[2].mxu0 %vm304_vm0, %v2644_v9  ;;  %2302 = vmatprep.subr.bf16.mxu1 %v2301_v51  ;;  %v1866_v60 = vld [vmem:[%s3263_s3 + $0xb8] sm:$0xff]  ;;  %s2459_s15 = scalar_lea.vmem %s2458_s14, 384  ;;  %p2460_p0 = scmp.lt.s32.totalorder %s3219_s23, %s2458_s14 }
  0x20   : > { %2083 = vmatprep.mubr.msk.f32.mxu0 %vm304_vm0, %v2647_v10  ;;  %2340 = vmatpush3.bf16.msra.mxu0 %v2768_v34  ;;  %v2305_v63 = vpack.c.bf16 %v1866_v60, %v1865_v59  ;;  %v1908_v4 = vld [vmem:[%s3263_s3 + $0x118] sm:$0xff] }
  0x21   : > { %2342 = vmatprep.subr.bf16.mxu0 %v2784_v40  ;;  %v2844_v23 = vpack.c.bf16 %v1908_v4, %v1907_v3  ;;  %v740_v3 = vld [vmem:[%s3263_s3] sm:$0xff]  ;;  %v741_v4 = vld [vmem:[%s3263_s3 + $0x8] sm:$0xff] }
  0x22   : > { %2304 = vmatpush3.bf16.msra.mxu1 %v2301_v51 }
  0x23   : > { %2084 = vmatmul.mubr.msk.f32.gmra.mrb[4].mxu0 %vm304_vm0, %v2654_v11  ;;  %2306 = vmatprep.subr.bf16.mxu1 %v2305_v63 }
  0x24   : > { %2086 = vmatprep.mubr.msk.f32.mxu0 %vm304_vm0, %v2657_v12  ;;  %2344 = vmatpush3.bf16.msra.mxu0 %v2784_v40 }
  0x25   : > { %2346 = vmatprep.subr.bf16.mxu0 %v2805_v47 }
  0x26   : > { %2308 = vmatpush3.bf16.msra.mxu1 %v2305_v63 }
  0x27   : > { %2087 = vmatmul.mubr.msk.f32.gmra.mrb[6].mxu0 %vm304_vm0, %v2664_v13 }
  0x28   : > { %2089 = vmatprep.mubr.msk.f32.mxu0 %vm304_vm0, %v2667_v14  ;;  %2348 = vmatpush3.bf16.msra.mxu0 %v2805_v47 }
  0x29   : > { %2350 = vmatprep.subr.bf16.mxu0 %v2823_v58 }
  0x2b   : > { %2090 = vmatmul.mubr.msk.f32.gmra.mrb[8].mxu0 %vm304_vm0, %v2674_v15 }
  0x2c   : > { %2092 = vmatprep.mubr.msk.f32.mxu0 %vm304_vm0, %v2677_v16  ;;  %2352 = vmatpush3.bf16.msra.mxu0 %v2823_v58 }
  0x2d   : > { %2354 = vmatprep.subr.bf16.mxu0 %v2844_v23 }
  0x2f   : > { %2093 = vmatmul.mubr.msk.f32.gmra.mrb[10].mxu0 %vm304_vm0, %v2684_v17 }
  0x30   : > { %2095 = vmatprep.mubr.msk.f32.mxu0 %vm304_vm0, %v2687_v18  ;;  %2356 = vmatpush3.bf16.msra.mxu0 %v2844_v23 }
  0x33   : > { %2096 = vmatmul.mubr.msk.f32.gmra.mrb[12].mxu0 %vm304_vm0, %v2694_v19 }
  0x34   : > { %2098 = vmatprep.mubr.msk.f32.mxu0 %vm304_vm0, %v2697_v20 }
  0x37   : > { %2099 = vmatmul.mubr.msk.f32.gmra.mrb[14].mxu0 %vm304_vm0, %v2704_v21 }
  0xee   : > { %v2079_v50 = vpop.f32.mrb[0].mxu0 }
  0xef   : > { %v425_v52 = vadd.f32 %v2079_v50, %v2796_v44  ;;  %v419_v53 = vpop.f32.mrb[1].mxu0 }
  0xf0   : > { %v420_v54 = vadd.f32 %v2796_v44, %v419_v53 }
  0xf1   : > { %v499_v57 = vmax.f32 %v425_v52, 0.0 }
  0xf2   : > { %v498_v61 = vmax.f32 %v420_v54, 0.0  ;;  %v2082_v62 = vpop.f32.mrb[2].mxu0 }
  0xf3   : > { %532 = vst.msk [vmem:[#allocation2 + $0x9] sm:$0xff] %vm304_vm0, %v499_v57  ;;  %v435_v0 = vadd.f32 %v2082_v62, %v2796_v44  ;;  %597 = vrot.lane.b32.xlu0 %v499_v57, %s2518_s16  ;;  %v429_v1 = vpop.f32.mrb[3].mxu0 }
  0xf4   : > { %531 = vst.msk [vmem:[#allocation2 + $0x1] sm:$0xff] %vm304_vm0, %v498_v61  ;;  %v430_v2 = vadd.f32 %v2796_v44, %v429_v1 }
  0xf5   : > { %v501_v5 = vmax.f32 %v435_v0, 0.0 }
  0xf6   : > { %v500_v24 = vmax.f32 %v430_v2, 0.0  ;;  %v2085_v25 = vpop.f32.mrb[4].mxu0 }
  0xf7   : > { %534 = vst.msk [vmem:[#allocation2 + $0x21] sm:$0xff] %vm304_vm0, %v501_v5  ;;  %601 = vrot.lane.b32.xlu1 %v501_v5, %s2518_s16  ;;  %595 = vrot.lane.b32.xlu0 %v498_v61, %s2518_s16  ;;  %v445_v26 = vadd.f32 %v2085_v25, %v2796_v44  ;;  %v439_v27 = vpop.f32.mrb[5].mxu0  ;;  %v2888_v25 = vpack.c.bf16 %v741_v4, %v740_v3  ;;  %v745_v3 = vld [vmem:[%s3263_s3 + $0x28] sm:$0xff] }
  0xf8   : > { %533 = vst.msk [vmem:[#allocation2 + $0x19] sm:$0xff] %vm304_vm0, %v500_v24  ;;  %v440_v28 = vadd.f32 %v2796_v44, %v439_v27 }
  0xf9   : > { %v503_v29 = vmax.f32 %v445_v26, 0.0  ;;  %2310 = vmatprep.subr.bf16.mxu1 %v2888_v25 }
  0xfa   : > { %v502_v31 = vmax.f32 %v440_v28, 0.0  ;;  %v564_v32 = vld [vmem:[#allocation2 + $0xa] sm:$0xff]  ;;  %v2088_v33 = vpop.f32.mrb[6].mxu0 }
  0xfb   : > { %536 = vst.msk [vmem:[#allocation2 + $0x39] sm:$0xff] %vm304_vm0, %v503_v29  ;;  %661 = vrot.lane.b32.xlu1 %v564_v32, %s2519_s21  ;;  %599 = vrot.lane.b32.xlu0 %v500_v24, %s2518_s16  ;;  %v455_v35 = vadd.f32 %v2088_v33, %v2796_v44  ;;  %v449_v36 = vpop.f32.mrb[7].mxu0  ;;  %v563_v49 = vld [vmem:[#allocation2 + $0x2] sm:$0xff] }
  0xfc   : > { %535 = vst.msk [vmem:[#allocation2 + $0x31] sm:$0xff] %vm304_vm0, %v502_v31  ;;  %v450_v37 = vadd.f32 %v2796_v44, %v449_v36 }
  0xfd   : > { %v505_v38 = vmax.f32 %v455_v35, 0.0 }
  0xfe   : > { %v504_v39 = vmax.f32 %v450_v37, 0.0  ;;  %v2091_v41 = vpop.f32.mrb[8].mxu0  ;;  %v566_v56 = vld [vmem:[#allocation2 + $0x22] sm:$0xff] }
  0xff   : > { %605 = vrot.lane.b32.xlu1 %v503_v29, %s2518_s16  ;;  %603 = vrot.lane.b32.xlu0 %v502_v31, %s2518_s16  ;;  %538 = vst.msk [vmem:[#allocation2 + $0x51] sm:$0xff] %vm304_vm0, %v505_v38  ;;  %v465_v42 = vadd.f32 %v2091_v41, %v2796_v44  ;;  %v459_v43 = vpop.f32.mrb[9].mxu0  ;;  %v565_v48 = vld [vmem:[#allocation2 + $0x1a] sm:$0xff] }
 0x100   : > { %537 = vst.msk [vmem:[#allocation2 + $0x49] sm:$0xff] %vm304_vm0, %v504_v39  ;;  %v460_v45 = vadd.f32 %v2796_v44, %v459_v43  ;;  %v550_v4 = vld [vmem:[#allocation2 + $0x20] sm:$0xff] }
 0x101   : > { %v507_v46 = vmax.f32 %v465_v42, 0.0 }
 0x102   : > { %v506_v50 = vmax.f32 %v460_v45, 0.0  ;;  %v2094_v51 = vpop.f32.mrb[10].mxu0  ;;  %v568_v28 = vld [vmem:[#allocation2 + $0x3a] sm:$0xff] }
 0x103   : > { %663 = vrot.lane.b32.xlu0 %v565_v48, %s2519_s21  ;;  %659 = vrot.lane.b32.xlu1 %v563_v49, %s2519_s21  ;;  %540 = vst.msk [vmem:[#allocation2 + $0x69] sm:$0xff] %vm304_vm0, %v507_v46  ;;  %v475_v52 = vadd.f32 %v2094_v51, %v2796_v44  ;;  %v469_v53 = vpop.f32.mrb[11].mxu0  ;;  %v567_v0 = vld [vmem:[#allocation2 + $0x32] sm:$0xff] }
 0x104   : > { %539 = vst.msk [vmem:[#allocation2 + $0x61] sm:$0xff] %vm304_vm0, %v506_v50  ;;  %v470_v54 = vadd.f32 %v2796_v44, %v469_v53  ;;  %v742_v51 = vld [vmem:[%s3263_s3 + $0x10] sm:$0xff]  ;;  %v547_v53 = vld [vmem:[#allocation2] sm:$0xff] }
 0x105   : > { %v509_v55 = vmax.f32 %v475_v52, 0.0  ;;  %v743_v52 = vld [vmem:[%s3263_s3 + $0x18] sm:$0xff] }
 0x106   : > { %v508_v57 = vmax.f32 %v470_v54, 0.0  ;;  %v2097_v59 = vpop.f32.mrb[12].mxu0  ;;  %v570_v32 = vld [vmem:[#allocation2 + $0x52] sm:$0xff] }
 0x107   : > { %607 = vrot.lane.b32.xlu0 %v504_v39, %s2518_s16  ;;  %665 = vrot.lane.b32.xlu1 %v566_v56, %s2519_s21  ;;  %542 = vst.msk [vmem:[#allocation2 + $0x81] sm:$0xff] %vm304_vm0, %v509_v55  ;;  %v485_v60 = vadd.f32 %v2097_v59, %v2796_v44  ;;  %v479_v61 = vpop.f32.mrb[13].mxu0  ;;  %v569_v31 = vld [vmem:[#allocation2 + $0x4a] sm:$0xff]  ;;  %v549_v54 = vld [vmem:[#allocation2 + $0x18] sm:$0xff] }
 0x108   : > { %541 = vst.msk [vmem:[#allocation2 + $0x79] sm:$0xff] %vm304_vm0, %v508_v57  ;;  %v480_v62 = vadd.f32 %v2796_v44, %v479_v61 }
 0x109   : > { %v511_v63 = vmax.f32 %v485_v60, 0.0 }
 0x10a   : > { %v510_v1 = vmax.f32 %v480_v62, 0.0  ;;  %v2100_v2 = vpop.f32.mrb[14].mxu0  ;;  %v572_v33 = vld [vmem:[#allocation2 + $0x6a] sm:$0xff] }
 0x10b   : > { %667 = vrot.lane.b32.xlu0 %v567_v0, %s2519_s21  ;;  %609 = vrot.lane.b32.xlu1 %v505_v38, %s2518_s16  ;;  %544 = vst.msk [vmem:[#allocation2 + $0x99] sm:$0xff] %vm304_vm0, %v511_v63  ;;  %v495_v5 = vadd.f32 %v2100_v2, %v2796_v44  ;;  %v489_v24 = vpop.f32.mrb[15].mxu0  ;;  %v2313_v0 = vpack.c.bf16 %v743_v52, %v742_v51  ;;  %v744_v2 = vld [vmem:[%s3263_s3 + $0x20] sm:$0xff] }
 0x10c   : > { %543 = vst.msk [vmem:[#allocation2 + $0x91] sm:$0xff] %vm304_vm0, %v510_v1  ;;  %v490_v26 = vadd.f32 %v2796_v44, %v489_v24  ;;  %v571_v44 = vld [vmem:[#allocation2 + $0x62] sm:$0xff] }
 0x10d   : > { %v513_v27 = vmax.f32 %v495_v5, 0.0 }
 0x10e   : > { %v512_v29 = vmax.f32 %v490_v26, 0.0  ;;  %v574_v36 = vld [vmem:[#allocation2 + $0x82] sm:$0xff] }
 0x10f   : > { %611 = vrot.lane.b32.xlu0 %v506_v50, %s2518_s16  ;;  %669 = vrot.lane.b32.xlu1 %v568_v28, %s2519_s21  ;;  %546 = vst.msk [vmem:[#allocation2 + $0xb1] sm:$0xff] %vm304_vm0, %v513_v27  ;;  %v573_v35 = vld [vmem:[#allocation2 + $0x7a] sm:$0xff]  ;;  %v2317_v28 = vpack.c.bf16 %v745_v3, %v744_v2 }
 0x110   : > { %545 = vst.msk [vmem:[#allocation2 + $0xa9] sm:$0xff] %vm304_vm0, %v512_v29 }
 0x112   : > { %v576_v39 = vld [vmem:[#allocation2 + $0x9a] sm:$0xff] }
 0x113   : > { %671 = vrot.lane.b32.xlu0 %v569_v31, %s2519_s21  ;;  %613 = vrot.lane.b32.xlu1 %v507_v46, %s2518_s16  ;;  %v575_v37 = vld [vmem:[#allocation2 + $0x92] sm:$0xff] }
 0x114   : > { %v747_v31 = vld [vmem:[%s3263_s3 + $0x38] sm:$0xff] }
 0x116   : > { %v578_v41 = vld [vmem:[#allocation2 + $0xb2] sm:$0xff] }
 0x117   : > { %615 = vrot.lane.b32.xlu0 %v508_v57, %s2518_s16  ;;  %673 = vrot.lane.b32.xlu1 %v570_v32, %s2519_s21  ;;  %v577_v38 = vld [vmem:[#allocation2 + $0xaa] sm:$0xff] }
 0x118   : > { %v551_v32 = vld [vmem:[#allocation2 + $0x30] sm:$0xff] }
 0x11b   : > { %675 = vrot.lane.b32.xlu0 %v571_v44, %s2519_s21  ;;  %617 = vrot.lane.b32.xlu1 %v509_v55, %s2518_s16  ;;  %v548_v55 = vld [vmem:[#allocation2 + $0x8] sm:$0xff] }
 0x11f   : > { %619 = vrot.lane.b32.xlu0 %v510_v1, %s2518_s16  ;;  %677 = vrot.lane.b32.xlu1 %v572_v33, %s2519_s21 }
 0x123   : > { %679 = vrot.lane.b32.xlu0 %v573_v35, %s2519_s21  ;;  %621 = vrot.lane.b32.xlu1 %v511_v63, %s2518_s16 }
 0x127   : > { %623 = vrot.lane.b32.xlu0 %v512_v29, %s2518_s16  ;;  %681 = vrot.lane.b32.xlu1 %v574_v36, %s2519_s21  ;;  %v746_v29 = vld [vmem:[%s3263_s3 + $0x30] sm:$0xff] }
 0x128   : > { %v2321_v36 = vpack.c.bf16 %v747_v31, %v746_v29 }
 0x12b   : > { %683 = vrot.lane.b32.xlu0 %v575_v37, %s2519_s21  ;;  %625 = vrot.lane.b32.xlu1 %v513_v27, %s2518_s16  ;;  %v748_v37 = vld [vmem:[%s3263_s3 + $0x40] sm:$0xff] }
 0x12f   : > { %687 = vrot.lane.b32.xlu0 %v577_v38, %s2519_s21  ;;  %685 = vrot.lane.b32.xlu1 %v576_v39, %s2519_s21  ;;  %v749_v38 = vld [vmem:[%s3263_s3 + $0x48] sm:$0xff]  ;;  %v552_v39 = vld [vmem:[#allocation2 + $0x38] sm:$0xff] }
 0x133   : > { %689 = vrot.lane.b32.xlu1 %v578_v41, %s2519_s21 }
 0x165   : > { %v598_v42 = vpop.permute.xlu0 %597 }
 0x166   : > { %v708_v61 = vsel %vm304_vm0, %v548_v55, %v598_v42 }
 0x169   : > { %v602_v43 = vpop.permute.xlu1 %601  ;;  %v596_v45 = vpop.permute.xlu0 %595 }
 0x16a   : > { %v707_v56 = vsel %vm304_vm0, %v547_v53, %v596_v45  ;;  %v710_v5 = vsel %vm304_vm0, %v550_v4, %v602_v43 }
 0x16d   : > { %v662_v46 = vpop.permute.xlu1 %661  ;;  %v600_v48 = vpop.permute.xlu0 %599 }
 0x16e   : > { %v709_v57 = vsel %vm304_vm0, %v549_v54, %v600_v48  ;;  %v2930_v1 = vsel %vm723_vm2, %v708_v61, %v662_v46  ;;  %v2325_v46 = vpack.c.bf16 %v749_v38, %v748_v37  ;;  %v750_v48 = vld [vmem:[%s3263_s3 + $0x50] sm:$0xff]  ;;  %v558_v37 = vld [vmem:[#allocation2 + $0x80] sm:$0xff] }
 0x171   : > { %v606_v49 = vpop.permute.xlu1 %605  ;;  %v604_v50 = vpop.permute.xlu0 %603 }
 0x172   : > { %v712_v41 = vsel %vm304_vm0, %v552_v39, %v606_v49  ;;  %v751_v49 = vld [vmem:[%s3263_s3 + $0x58] sm:$0xff] }
 0x173   : > { %v2329_v55 = vpack.c.bf16 %v751_v49, %v750_v48 }
 0x175   : > { %v664_v59 = vpop.permute.xlu0 %663  ;;  %v660_v60 = vpop.permute.xlu1 %659 }
 0x176   : > { %v2924_v62 = vsel %vm723_vm2, %v709_v57, %v664_v59  ;;  %v2927_v63 = vsel %vm723_vm2, %v707_v56, %v660_v60  ;;  %v554_v56 = vld [vmem:[#allocation2 + $0x50] sm:$0xff] }
 0x177   : > { %2125 = vmatprep.mubr.msk.f32.mxu1 %vm765_vm3, %v2927_v63  ;;  %2221 = vmatprep.mubr.msk.f32.mxu0 %vm765_vm3, %v2924_v62 }
 0x178   : > { %2126 = vmatmul.mubr.msk.f32.vlgmr.msra.gmra.mrb[0].mxu1 %vm765_vm3, %v2930_v1 }
 0x179   : > { %v608_v24 = vpop.permute.xlu0 %607  ;;  %v666_v26 = vpop.permute.xlu1 %665  ;;  %2128 = vmatprep.mubr.msk.f32.mxu1 %vm765_vm3, %v2924_v62  ;;  %2312 = vmatpush3.bf16.msra.mxu1 %v2888_v25  ;;  %v711_v25 = vsel %vm304_vm0, %v551_v32, %v604_v50  ;;  %v553_v50 = vld [vmem:[#allocation2 + $0x48] sm:$0xff]  ;;  %v557_v32 = vld [vmem:[#allocation2 + $0x78] sm:$0xff] }
 0x17a   : > { %v2949_v27 = vsel %vm723_vm2, %v710_v5, %v666_v26  ;;  %2314 = vmatprep.subr.bf16.mxu1 %v2313_v0  ;;  %v713_v51 = vsel %vm304_vm0, %v553_v50, %v608_v24  ;;  %v556_v24 = vld [vmem:[#allocation2 + $0x68] sm:$0xff] }
 0x17b   : > { %2222 = vmatmul.mubr.msk.f32.vlgmr.msra.gmra.mrb[16].mxu0 %vm765_vm3, %v2949_v27 }
 0x17c   : > { %2129 = vmatmul.mubr.msk.f32.gmra.mrb[2].mxu1 %vm765_vm3, %v2949_v27 }
 0x17d   : > { %v668_v44 = vpop.permute.xlu0 %667  ;;  %v610_v33 = vpop.permute.xlu1 %609  ;;  %2316 = vmatpush3.bf16.msra.mxu1 %v2313_v0  ;;  %v555_v0 = vld [vmem:[#allocation2 + $0x60] sm:$0xff] }
 0x17e   : > { %v2963_v35 = vsel %vm723_vm2, %v711_v25, %v668_v44  ;;  %2318 = vmatprep.subr.bf16.mxu1 %v2317_v28  ;;  %v714_v57 = vsel %vm304_vm0, %v554_v56, %v610_v33 }
 0x17f   : > { %2131 = vmatprep.mubr.msk.f32.mxu1 %vm765_vm3, %v2963_v35  ;;  %2224 = vmatprep.mubr.msk.f32.mxu0 %vm765_vm3, %v2963_v35 }
 0x181   : > { %v612_v42 = vpop.permute.xlu0 %611  ;;  %v670_v43 = vpop.permute.xlu1 %669  ;;  %2320 = vmatpush3.bf16.msra.mxu1 %v2317_v28 }
 0x182   : > { %v2977_v45 = vsel %vm723_vm2, %v712_v41, %v670_v43  ;;  %2322 = vmatprep.subr.bf16.mxu1 %v2321_v36  ;;  %v715_v2 = vsel %vm304_vm0, %v555_v0, %v612_v42  ;;  %v559_v43 = vld [vmem:[#allocation2 + $0x90] sm:$0xff] }
 0x183   : > { %2132 = vmatmul.mubr.msk.f32.gmra.mrb[4].mxu1 %vm765_vm3, %v2977_v45  ;;  %2225 = vmatmul.mubr.msk.f32.gmra.mrb[18].mxu0 %vm765_vm3, %v2977_v45  ;;  %v562_v0 = vld [vmem:[#allocation2 + $0xb0] sm:$0xff] }
 0x185   : > { %v672_v52 = vpop.permute.xlu0 %671  ;;  %v614_v53 = vpop.permute.xlu1 %613  ;;  %2324 = vmatpush3.bf16.msra.mxu1 %v2321_v36 }
 0x186   : > { %v2991_v54 = vsel %vm723_vm2, %v713_v51, %v672_v52  ;;  %2326 = vmatprep.subr.bf16.mxu1 %v2325_v46  ;;  %v716_v26 = vsel %vm304_vm0, %v556_v24, %v614_v53  ;;  %v560_v51 = vld [vmem:[#allocation2 + $0x98] sm:$0xff]  ;;  %v561_v52 = vld [vmem:[#allocation2 + $0xa8] sm:$0xff] }
 0x187   : > { %2134 = vmatprep.mubr.msk.f32.mxu1 %vm765_vm3, %v2991_v54  ;;  %2227 = vmatprep.mubr.msk.f32.mxu0 %vm765_vm3, %v2991_v54 }
 0x189   : > { %v616_v59 = vpop.permute.xlu0 %615  ;;  %v674_v60 = vpop.permute.xlu1 %673  ;;  %2328 = vmatpush3.bf16.msra.mxu1 %v2325_v46 }
 0x18a   : > { %v2999_v61 = vsel %vm723_vm2, %v714_v57, %v674_v60  ;;  %2330 = vmatprep.subr.bf16.mxu1 %v2329_v55  ;;  %v717_v25 = vsel %vm304_vm0, %v557_v32, %v616_v59 }
 0x18b   : > { %2135 = vmatmul.mubr.msk.f32.gmra.mrb[6].mxu1 %vm765_vm3, %v2999_v61  ;;  %2228 = vmatmul.mubr.msk.f32.gmra.mrb[20].mxu0 %vm765_vm3, %v2999_v61 }
 0x18d   : > { %v676_v3 = vpop.permute.xlu0 %675  ;;  %v618_v4 = vpop.permute.xlu1 %617  ;;  %2332 = vmatpush3.bf16.msra.mxu1 %v2329_v55 }
 0x18e   : > { %v3007_v5 = vsel %vm723_vm2, %v715_v2, %v676_v3  ;;  %2365 = vmatprep.subr.bf16.mxu1 %v2758_v30  ;;  %v718_v38 = vsel %vm304_vm0, %v558_v37, %v618_v4 }
 0x18f   : > { %2137 = vmatprep.mubr.msk.f32.mxu1 %vm765_vm3, %v3007_v5  ;;  %2230 = vmatprep.mubr.msk.f32.mxu0 %vm765_vm3, %v3007_v5 }
 0x191   : > { %v620_v28 = vpop.permute.xlu0 %619  ;;  %v678_v29 = vpop.permute.xlu1 %677 }
 0x192   : > { %v733_v31 = vsel %vm723_vm2, %v716_v26, %v678_v29  ;;  %v719_v46 = vsel %vm304_vm0, %v559_v43, %v620_v28  ;;  %v3095_v29 = vld [vmem:[%s3264_s4] ss:$0 sm:$0xff] }
 0x193   : > { %2138 = vmatmul.mubr.msk.f32.gmra.mrb[8].mxu1 %vm765_vm3, %v733_v31  ;;  %2231 = vmatmul.mubr.msk.f32.gmra.mrb[22].mxu0 %vm765_vm3, %v733_v31 }
 0x195   : > { %v680_v44 = vpop.permute.xlu0 %679  ;;  %v622_v33 = vpop.permute.xlu1 %621 }
 0x196   : > { %v734_v36 = vsel %vm723_vm2, %v717_v25, %v680_v44  ;;  %v720_v53 = vsel %vm304_vm0, %v560_v51, %v622_v33 }
 0x197   : > { %2140 = vmatprep.mubr.msk.f32.mxu1 %vm765_vm3, %v734_v36  ;;  %2233 = vmatprep.mubr.msk.f32.mxu0 %vm765_vm3, %v734_v36 }
 0x199   : > { %v624_v39 = vpop.permute.xlu0 %623  ;;  %v682_v41 = vpop.permute.xlu1 %681 }
 0x19a   : > { %v735_v42 = vsel %vm723_vm2, %v718_v38, %v682_v41  ;;  %v721_v55 = vsel %vm304_vm0, %v561_v52, %v624_v39 }
 0x19b   : > { %2141 = vmatmul.mubr.msk.f32.gmra.mrb[10].mxu1 %vm765_vm3, %v735_v42  ;;  %2234 = vmatmul.mubr.msk.f32.gmra.mrb[24].mxu0 %vm765_vm3, %v735_v42 }
 0x19d   : > { %v684_v48 = vpop.permute.xlu0 %683  ;;  %v626_v49 = vpop.permute.xlu1 %625 }
 0x19e   : > { %v736_v50 = vsel %vm723_vm2, %v719_v46, %v684_v48  ;;  %v722_v2 = vsel %vm304_vm0, %v562_v0, %v626_v49 }
 0x19f   : > { %2143 = vmatprep.mubr.msk.f32.mxu1 %vm765_vm3, %v736_v50  ;;  %2236 = vmatprep.mubr.msk.f32.mxu0 %vm765_vm3, %v736_v50 }
 0x1a1   : > { %v688_v56 = vpop.permute.xlu0 %687  ;;  %v686_v57 = vpop.permute.xlu1 %685 }
 0x1a2   : > { %v738_v59 = vsel %vm723_vm2, %v721_v55, %v688_v56  ;;  %v737_v60 = vsel %vm723_vm2, %v720_v53, %v686_v57 }
 0x1a3   : > { %2144 = vmatmul.mubr.msk.f32.gmra.mrb[12].mxu1 %vm765_vm3, %v737_v60  ;;  %2237 = vmatmul.mubr.msk.f32.gmra.mrb[26].mxu0 %vm765_vm3, %v737_v60 }
 0x1a4   : > { %2146 = vmatprep.mubr.msk.f32.mxu1 %vm765_vm3, %v738_v59 }
 0x1a5   : > { %v690_v3 = vpop.permute.xlu1 %689 }
 0x1a6   : > { %v739_v4 = vsel %vm723_vm2, %v722_v2, %v690_v3 }
 0x1a7   : > { %2147 = vmatmul.mubr.msk.f32.gmra.mrb[14].mxu1 %vm765_vm3, %v739_v4 }
 0x1a8   : > { %2173 = vmatprep.mubr.f32.mxu1 %v2517_v22 }
 0x1ab   : > { %2174 = vmatmul.mubr.f32.vlgmr.msra.gmra.mrb[0].mxu1 %v2517_v22 }
 0x1ac   : > { %2371 = vmatpush3.bf16.msra.mxu1 %v2758_v30  ;;  %2176 = vmatprep.mubr.msk.f32.mxu1 %vm765_vm3, %v2927_v63  ;;  %v1336_v30 = vld [vmem:[%s3265_s5] sm:$0xff] }
 0x1ad   : > { %2366 = vmatprep.subr.bf16.mxu1 %v2768_v34 }
 0x1af   : > { %2177 = vmatmul.mubr.msk.f32.gmra.mrb[2].mxu1 %vm765_vm3, %v2930_v1 }
 0x1b0   : > { %2179 = vmatprep.mubr.msk.f32.mxu1 %vm765_vm3, %v2924_v62  ;;  %2372 = vmatpush3.bf16.msra.mxu1 %v2768_v34  ;;  %v1337_v34 = vld [vmem:[%s3265_s5 + $0x8] sm:$0xff] }
 0x1b1   : > { %2367 = vmatprep.subr.bf16.mxu1 %v2784_v40 }
 0x1b3   : > { %2180 = vmatmul.mubr.msk.f32.gmra.mrb[4].mxu1 %vm765_vm3, %v2949_v27 }
 0x1b4   : > { %2182 = vmatprep.mubr.msk.f32.mxu1 %vm765_vm3, %v2963_v35  ;;  %2373 = vmatpush3.bf16.msra.mxu1 %v2784_v40  ;;  %v2357_v40 = vpack.c.bf16 %v1337_v34, %v1336_v30 }
 0x1b5   : > { %2368 = vmatprep.subr.bf16.mxu1 %v2805_v47 }
 0x1b6   : > { %2358 = vmatprep.subr.bf16.mxu0 %v2357_v40 }
 0x1b7   : > { %2183 = vmatmul.mubr.msk.f32.gmra.mrb[6].mxu1 %vm765_vm3, %v2977_v45  ;;  %2360 = vmatpush3.bf16.msra.mxu0 %v2357_v40 }
 0x1b8   : > { %2185 = vmatprep.mubr.msk.f32.mxu1 %vm765_vm3, %v2991_v54  ;;  %2374 = vmatpush3.bf16.msra.mxu1 %v2805_v47  ;;  %v1338_v47 = vld [vmem:[%s3265_s5 + $0x10] sm:$0xff] }
 0x1b9   : > { %2369 = vmatprep.subr.bf16.mxu1 %v2823_v58 }
 0x1bb   : > { %2186 = vmatmul.mubr.msk.f32.gmra.mrb[8].mxu1 %vm765_vm3, %v2999_v61 }
 0x1bc   : > { %2188 = vmatprep.mubr.msk.f32.mxu1 %vm765_vm3, %v3007_v5  ;;  %2375 = vmatpush3.bf16.msra.mxu1 %v2823_v58  ;;  %v1339_v58 = vld [vmem:[%s3265_s5 + $0x18] sm:$0xff] }
 0x1bd   : > { %2370 = vmatprep.subr.bf16.mxu1 %v2844_v23 }
 0x1bf   : > { %2189 = vmatmul.mubr.msk.f32.gmra.mrb[10].mxu1 %vm765_vm3, %v733_v31 }
 0x1c0   : > { %2191 = vmatprep.mubr.msk.f32.mxu1 %vm765_vm3, %v734_v36  ;;  %2376 = vmatpush3.bf16.msra.mxu1 %v2844_v23 }
 0x1c3   : > { %2192 = vmatmul.mubr.msk.f32.gmra.mrb[12].mxu1 %vm765_vm3, %v735_v42 }
 0x1c4   : > { %2194 = vmatprep.mubr.msk.f32.mxu1 %vm765_vm3, %v736_v50 }
 0x1c7   : > { %2195 = vmatmul.mubr.msk.f32.gmra.mrb[14].mxu1 %vm765_vm3, %v737_v60 }
 0x1c8   : > { %2239 = vmatprep.mubr.msk.f32.mxu1 %vm765_vm3, %v738_v59 }
 0x1cb   : > { %2240 = vmatmul.mubr.msk.f32.vlgmr.msra.gmra.mrb[12].mxu1 %vm765_vm3, %v739_v4 }
 0x1cc   : > { %2242 = vmatprep.mubr.f32.mxu1 %v2517_v22 }
 0x1cf   : > { %2243 = vmatmul.mubr.f32.gmra.mrb[14].mxu1 %v2517_v22  ;;  %v2361_v22 = vpack.c.bf16 %v1339_v58, %v1338_v47 }
 0x1d1   : > { %2362 = vmatprep.subr.bf16.mxu0 %v2361_v22 }
 0x1d2   : > { %2364 = vmatpush3.bf16.msra.mxu0 %v2361_v22 }
 0x24e   : > { %v2223_v23 = vpop.f32.mrb[16].mxu0 }
 0x24f   : > { %v1186_v62 = vpop.f32.mrb[17].mxu0 }
 0x256   : > { %v2226_v63 = vpop.f32.mrb[18].mxu0 }
 0x257   : > { %v1196_v1 = vpop.f32.mrb[19].mxu0 }
 0x25e   : > { %v2229_v27 = vpop.f32.mrb[20].mxu0 }
 0x25f   : > { %v1206_v35 = vpop.f32.mrb[21].mxu0 }
 0x266   : > { %v2232_v45 = vpop.f32.mrb[22].mxu0 }
 0x267   : > { %v1216_v54 = vpop.f32.mrb[23].mxu0 }
 0x26e   : > { %v2235_v61 = vpop.f32.mrb[24].mxu0 }
 0x26f   : > { %v1226_v5 = vpop.f32.mrb[25].mxu0 }
 0x276   : > { %v2238_v24 = vpop.f32.mrb[26].mxu0 }
 0x277   : > { %v1236_v26 = vpop.f32.mrb[27].mxu0 }
 0x27e   : > { %v2175_v28 = vpop.f32.mrb[0].mxu1 }
 0x27f   : > { %v2377_v31 = vadd.f32 %v2223_v23, %v2175_v28  ;;  %v1028_v32 = vpop.f32.mrb[1].mxu1 }
 0x280   : > { %v2378_v25 = vadd.f32 %v1186_v62, %v1028_v32 }
 0x281   : > { %v1289_v44 = vadd.f32 %v2377_v31, %v3095_v29 }
 0x282   : > { %v1288_v33 = vadd.f32 %v2378_v25, %v3095_v29  ;;  %v2178_v36 = vpop.f32.mrb[2].mxu1 }
 0x283   : > { %v1305_v37 = vmax.f32 %v1289_v44, 0.0  ;;  %v2379_v38 = vadd.f32 %v2226_v63, %v2178_v36  ;;  %v1038_v39 = vpop.f32.mrb[3].mxu1 }
 0x284   : > { %v1304_v41 = vmax.f32 %v1288_v33, 0.0  ;;  %v2380_v42 = vadd.f32 %v1196_v1, %v1038_v39 }
 0x285   : > { %v1291_v43 = vadd.f32 %v2379_v38, %v3095_v29  ;;  %v1321_v50 = vadd.f32 %v1305_v37, %v2634_v7 }
 0x286   : > { %v1320_v46 = vadd.f32 %v1304_v41, %v2629_v6  ;;  %v1290_v48 = vadd.f32 %v2380_v42, %v3095_v29  ;;  %v2181_v49 = vpop.f32.mrb[4].mxu1 }
 0x287   : > { %v1307_v51 = vmax.f32 %v1291_v43, 0.0  ;;  %v2381_v52 = vadd.f32 %v2229_v27, %v2181_v49  ;;  %v1048_v53 = vpop.f32.mrb[5].mxu1 }
 0x288   : > { %v1306_v55 = vmax.f32 %v1290_v48, 0.0  ;;  %v2382_v56 = vadd.f32 %v1206_v35, %v1048_v53  ;;  %2253 = vmatprep.mubr.msk.f32.mxu0 %vm304_vm0, %v1320_v46 }
 0x289   : > { %v1293_v57 = vadd.f32 %v2381_v52, %v3095_v29  ;;  %2254 = vmatmul.mubr.msk.f32.vlgmr.msra.gmra.mrb[28].mxu0 %vm304_vm0, %v1321_v50  ;;  %v1323_v0 = vadd.f32 %v1307_v51, %v2644_v9 }
 0x28a   : > { %v1322_v59 = vadd.f32 %v1306_v55, %v2637_v8  ;;  %v1292_v6 = vadd.f32 %v2382_v56, %v3095_v29  ;;  %v2184_v60 = vpop.f32.mrb[6].mxu1 }
 0x28b   : > { %v1309_v2 = vmax.f32 %v1293_v57, 0.0  ;;  %v2383_v7 = vadd.f32 %v2232_v45, %v2184_v60  ;;  %v1058_v3 = vpop.f32.mrb[7].mxu1 }
 0x28c   : > { %v1308_v4 = vmax.f32 %v1292_v6, 0.0  ;;  %v2384_v30 = vadd.f32 %v1216_v54, %v1058_v3  ;;  %2256 = vmatprep.mubr.msk.f32.mxu0 %vm304_vm0, %v1322_v59 }
 0x28d   : > { %v1295_v34 = vadd.f32 %v2383_v7, %v3095_v29  ;;  %2257 = vmatmul.mubr.msk.f32.gmra.mrb[30].mxu0 %vm304_vm0, %v1323_v0  ;;  %v1325_v58 = vadd.f32 %v1309_v2, %v2654_v11 }
 0x28e   : > { %v1324_v40 = vadd.f32 %v1308_v4, %v2647_v10  ;;  %v1294_v8 = vadd.f32 %v2384_v30, %v3095_v29  ;;  %v2187_v47 = vpop.f32.mrb[8].mxu1 }
 0x28f   : > { %v1311_v22 = vmax.f32 %v1295_v34, 0.0  ;;  %v2385_v9 = vadd.f32 %v2235_v61, %v2187_v47  ;;  %v1068_v23 = vpop.f32.mrb[9].mxu1 }
 0x290   : > { %v1310_v62 = vmax.f32 %v1294_v8, 0.0  ;;  %v2386_v63 = vadd.f32 %v1226_v5, %v1068_v23  ;;  %2259 = vmatprep.mubr.msk.f32.mxu0 %vm304_vm0, %v1324_v40 }
 0x291   : > { %v1297_v1 = vadd.f32 %v2385_v9, %v3095_v29  ;;  %2260 = vmatmul.mubr.msk.f32.gmra.mrb[32].mxu0 %vm304_vm0, %v1325_v58  ;;  %v1327_v45 = vadd.f32 %v1311_v22, %v2664_v13 }
 0x292   : > { %v1326_v27 = vadd.f32 %v1310_v62, %v2657_v12  ;;  %v1296_v10 = vadd.f32 %v2386_v63, %v3095_v29  ;;  %v2190_v35 = vpop.f32.mrb[10].mxu1 }
 0x293   : > { %v1313_v54 = vmax.f32 %v1297_v1, 0.0  ;;  %v2387_v11 = vadd.f32 %v2238_v24, %v2190_v35  ;;  %v1078_v28 = vpop.f32.mrb[11].mxu1 }
 0x294   : > { %v1312_v61 = vmax.f32 %v1296_v10, 0.0  ;;  %v2388_v31 = vadd.f32 %v1236_v26, %v1078_v28  ;;  %2262 = vmatprep.mubr.msk.f32.mxu0 %vm304_vm0, %v1326_v27 }
 0x295   : > { %v1299_v5 = vadd.f32 %v2387_v11, %v3095_v29  ;;  %2263 = vmatmul.mubr.msk.f32.gmra.mrb[34].mxu0 %vm304_vm0, %v1327_v45  ;;  %v1329_v25 = vadd.f32 %v1313_v54, %v2674_v15 }
 0x296   : > { %v1328_v32 = vadd.f32 %v1312_v61, %v2667_v14  ;;  %v1298_v12 = vadd.f32 %v2388_v31, %v3095_v29 }
 0x297   : > { %v1315_v44 = vmax.f32 %v1299_v5, 0.0 }
 0x298   : > { %v1314_v33 = vmax.f32 %v1298_v12, 0.0  ;;  %2265 = vmatprep.mubr.msk.f32.mxu0 %vm304_vm0, %v1328_v32 }
 0x299   : > { %2266 = vmatmul.mubr.msk.f32.gmra.mrb[36].mxu0 %vm304_vm0, %v1329_v25  ;;  %v1331_v24 = vadd.f32 %v1315_v44, %v2684_v17 }
 0x29a   : > { %v1330_v13 = vadd.f32 %v1314_v33, %v2677_v16 }
 0x29c   : > { %2268 = vmatprep.mubr.msk.f32.mxu0 %vm304_vm0, %v1330_v13 }
 0x29d   : > { %2269 = vmatmul.mubr.msk.f32.gmra.mrb[38].mxu0 %vm304_vm0, %v1331_v24 }
 0x29e   : > { %v2241_v26 = vpop.f32.mrb[12].mxu1 }
 0x29f   : > { %v1301_v14 = vadd.f32 %v2241_v26, %v3095_v29  ;;  %v1246_v36 = vpop.f32.mrb[13].mxu1 }
 0x2a0   : > { %v1300_v15 = vadd.f32 %v3095_v29, %v1246_v36 }
 0x2a1   : > { %v1317_v37 = vmax.f32 %v1301_v14, 0.0 }
 0x2a2   : > { %v1316_v38 = vmax.f32 %v1300_v15, 0.0  ;;  %v2244_v39 = vpop.f32.mrb[14].mxu1 }
 0x2a3   : > { %v1303_v41 = vadd.f32 %v2244_v39, %v3095_v29  ;;  %v1256_v42 = vpop.f32.mrb[15].mxu1  ;;  %v1333_v43 = vadd.f32 %v1317_v37, %v2694_v19 }
 0x2a4   : > { %v1332_v16 = vadd.f32 %v1316_v38, %v2687_v18  ;;  %v1302_v17 = vadd.f32 %v3095_v29, %v1256_v42  ;;  %v3148_v18 = vld [vmem:[%s3266_s6] ss:$0 sm:$0xff] }
 0x2a5   : > { %v1319_v46 = vmax.f32 %v1303_v41, 0.0 }
 0x2a6   : > { %v1318_v48 = vmax.f32 %v1302_v17, 0.0  ;;  %2271 = vmatprep.mubr.msk.f32.mxu0 %vm304_vm0, %v1332_v16 }
 0x2a7   : > { %2272 = vmatmul.mubr.msk.f32.gmra.mrb[40].mxu0 %vm304_vm0, %v1333_v43  ;;  %v1335_v50 = vadd.f32 %v1319_v46, %v2704_v21 }
 0x2a8   : > { %v1334_v49 = vadd.f32 %v1318_v48, %v2697_v20 }
 0x2aa   : > { %2274 = vmatprep.mubr.msk.f32.mxu0 %vm304_vm0, %v1334_v49 }
 0x2ab   : > { %2275 = vmatmul.mubr.msk.f32.gmra.mrb[42].mxu0 %vm304_vm0, %v1335_v50 }
 0x35c   : > { %v2255_v51 = vpop.f32.mrb[28].mxu0 }
 0x35d   : > { %v1461_v19 = vpop.f32.mrb[29].mxu0  ;;  %v1467_v29 = vadd.f32 %v2255_v51, %v3148_v18 }
 0x35e   : > { %v1462_v52 = vadd.f32 %v3148_v18, %v1461_v19 }
 0x35f   : > { %v1541_v56 = vmax.f32 %v1467_v29, 0.0 }
 0x360   : > { %v2258_v53 = vpop.f32.mrb[30].mxu0  ;;  %v1540_v59 = vmax.f32 %v1462_v52, 0.0 }
 0x361   : > { %v1477_v20 = vadd.f32 %v2258_v53, %v3148_v18  ;;  %v1471_v55 = vpop.f32.mrb[31].mxu0 }
 0x362   : > { %v1472_v21 = vadd.f32 %v3148_v18, %v1471_v55 }
 0x363   : > { %v1543_v57 = vmax.f32 %v1477_v20, 0.0 }
 0x364   : > { %v1542_v6 = vmax.f32 %v1472_v21, 0.0  ;;  %v2261_v60 = vpop.f32.mrb[32].mxu0 }
 0x365   : > { %v3154_v0 = vmax.f32 %v1541_v56, %v1543_v57  ;;  %v1481_v2 = vpop.f32.mrb[33].mxu0  ;;  %v1487_v3 = vadd.f32 %v2261_v60, %v3148_v18 }
 0x366   : > { %v1556_v7 = vmax.f32 %v1540_v59, %v1542_v6  ;;  %v1482_v4 = vadd.f32 %v3148_v18, %v1481_v2 }
 0x367   : > { %v1574_v30 = vrot.slane %v3154_v0, 1  ;;  %v1603_v34 = vrot.slane %v3154_v0, 2  ;;  %v1632_v40 = vrot.slane %v3154_v0, 3  ;;  %v1661_v8 = vrot.slane %v3154_v0, 4 }
 0x368   : > { %v1573_v47 = vrot.slane %v1556_v7, 1  ;;  %v1602_v58 = vrot.slane %v1556_v7, 2  ;;  %v1631_v22 = vrot.slane %v1556_v7, 3  ;;  %v1660_v9 = vrot.slane %v1556_v7, 4  ;;  %v2264_v23 = vpop.f32.mrb[34].mxu0 }
 0x369   : > { %v1594_v62 = vmax.f32 %v3154_v0, %v1574_v30  ;;  %v1497_v63 = vadd.f32 %v2264_v23, %v3148_v18  ;;  %v1491_v1 = vpop.f32.mrb[35].mxu0  ;;  %v1545_v11 = vmax.f32 %v1487_v3, 0.0  ;;  %v1544_v31 = vmax.f32 %v1482_v4, 0.0 }
 0x36a   : > { %v1575_v27 = vsel %vm1572_vm4, %v1573_v47, %v1574_v30  ;;  %v1604_v10 = vsel %vm1601_vm5, %v1602_v58, %v1603_v34  ;;  %v1633_v35 = vsel %vm1630_vm6, %v1631_v22, %v1632_v40  ;;  %v1492_v45 = vadd.f32 %v3148_v18, %v1491_v1 }
 0x36b   : > { %v1593_v54 = vmax.f32 %v1556_v7, %v1575_v27  ;;  %v1547_v28 = vmax.f32 %v1497_v63, 0.0  ;;  %v1662_v61 = vsel %vm1659_vm7, %v1660_v9, %v1661_v8  ;;  %v1623_v33 = vmax.f32 %v1594_v62, %v1603_v34 }
 0x36c   : > { %v1546_v5 = vmax.f32 %v1492_v45, 0.0  ;;  %v2267_v32 = vpop.f32.mrb[36].mxu0 }
 0x36d   : > { %v1622_v12 = vmax.f32 %v1593_v54, %v1604_v10  ;;  %v1559_v25 = vmax.f32 %v1545_v11, %v1547_v28  ;;  %v1501_v44 = vpop.f32.mrb[37].mxu0  ;;  %v1507_v24 = vadd.f32 %v2267_v32, %v3148_v18  ;;  %v1652_v48 = vmax.f32 %v1623_v33, %v1632_v40 }
 0x36e   : > { %v1558_v13 = vmax.f32 %v1544_v31, %v1546_v5  ;;  %v1502_v43 = vadd.f32 %v3148_v18, %v1501_v44 }
 0x36f   : > { %v1651_v26 = vmax.f32 %v1622_v12, %v1633_v35  ;;  %v1577_v14 = vrot.slane %v1559_v25, 1  ;;  %v1606_v36 = vrot.slane %v1559_v25, 2  ;;  %v1635_v15 = vrot.slane %v1559_v25, 3 }
 0x370   : > { %v1664_v37 = vrot.slane %v1559_v25, 4  ;;  %v1576_v38 = vrot.slane %v1558_v13, 1  ;;  %v1605_v39 = vrot.slane %v1558_v13, 2  ;;  %v1634_v41 = vrot.slane %v1558_v13, 3  ;;  %v2270_v42 = vpop.f32.mrb[38].mxu0 }
 0x371   : > { %v1596_v16 = vmax.f32 %v1559_v25, %v1577_v14  ;;  %v1663_v17 = vrot.slane %v1558_v13, 4  ;;  %v1511_v46 = vpop.f32.mrb[39].mxu0  ;;  %v1517_v19 = vadd.f32 %v2270_v42, %v3148_v18  ;;  %v3177_v20 = vmax.f32 %v1651_v26, %v1662_v61 }
 0x372   : > { %v1578_v49 = vsel %vm1572_vm4, %v1576_v38, %v1577_v14  ;;  %v1607_v50 = vsel %vm1601_vm5, %v1605_v39, %v1606_v36  ;;  %v1636_v51 = vsel %vm1630_vm6, %v1634_v41, %v1635_v15  ;;  %v1512_v52 = vadd.f32 %v3148_v18, %v1511_v46 }
 0x373   : > { %v1595_v29 = vmax.f32 %v1558_v13, %v1578_v49  ;;  %v1665_v53 = vsel %vm1659_vm7, %v1663_v17, %v1664_v37  ;;  %v1549_v55 = vmax.f32 %v1507_v24, 0.0  ;;  %v1551_v21 = vmax.f32 %v1517_v19, 0.0 }
 0x374   : > { %v1625_v56 = vmax.f32 %v1596_v16, %v1606_v36  ;;  %v1548_v59 = vmax.f32 %v1502_v43, 0.0  ;;  %v1550_v6 = vmax.f32 %v1512_v52, 0.0  ;;  %v1719_v3 = vrot.slane %v3177_v20, 6 }
 0x375   : > { %v1624_v57 = vmax.f32 %v1595_v29, %v1607_v50  ;;  %v1561_v60 = vmax.f32 %v1549_v55, %v1551_v21  ;;  %v1681_v4 = vmax.f32 %v1652_v48, %v1661_v8  ;;  %v1702_v1 = vrot.slane %v3177_v20, 2 }
 0x376   : > { %v1654_v0 = vmax.f32 %v1625_v56, %v1635_v15  ;;  %v1560_v7 = vmax.f32 %v1548_v59, %v1550_v6  ;;  %v1711_v5 = vrot.slane %v3177_v20, 4 }
 0x377   : > { %v1653_v2 = vmax.f32 %v1624_v57, %v1636_v51  ;;  %v1580_v30 = vrot.slane %v1561_v60, 1  ;;  %v1609_v34 = vrot.slane %v1561_v60, 2  ;;  %v1638_v40 = vrot.slane %v1561_v60, 3 }
 0x378   : > { %v1667_v47 = vrot.slane %v1561_v60, 4  ;;  %v1579_v58 = vrot.slane %v1560_v7, 1  ;;  %v1608_v22 = vrot.slane %v1560_v7, 2  ;;  %v1637_v9 = vrot.slane %v1560_v7, 3 }
 0x379   : > { %v1666_v23 = vrot.slane %v1560_v7, 4  ;;  %v1682_v63 = vmax.f32 %v1653_v2, %v1665_v53  ;;  %v1598_v27 = vmax.f32 %v1561_v60, %v1580_v30  ;;  %v1683_v10 = vmax.f32 %v1654_v0, %v1664_v37 }
 0x37a   : > { %v2273_v62 = vpop.f32.mrb[40].mxu0  ;;  %v1581_v35 = vsel %vm1572_vm4, %v1579_v58, %v1580_v30  ;;  %v1610_v45 = vsel %vm1601_vm5, %v1608_v22, %v1609_v34  ;;  %v1639_v54 = vsel %vm1630_vm6, %v1637_v9, %v1638_v40  ;;  %v1740_v11 = vrot.slane %v1681_v4, 2 }
 0x37b   : > { %v1521_v8 = vpop.f32.mrb[41].mxu0  ;;  %v1597_v28 = vmax.f32 %v1560_v7, %v1581_v35  ;;  %v1668_v61 = vsel %vm1659_vm7, %v1666_v23, %v1667_v47  ;;  %v1720_v31 = vrot.slane %v1682_v63, 5  ;;  %v1527_v32 = vadd.f32 %v2273_v62, %v3148_v18 }
 0x37c   : > { %v1703_v12 = vrot.slane %v1682_v63, 1  ;;  %v1627_v25 = vmax.f32 %v1598_v27, %v1609_v34  ;;  %v1741_v44 = vrot.slane %v1683_v10, 1  ;;  %v1522_v13 = vadd.f32 %v3148_v18, %v1521_v8 }
 0x37d   : > { %v1626_v33 = vmax.f32 %v1597_v28, %v1610_v45  ;;  %v1721_v26 = vsel %vm1693_vm8, %v1720_v31, %v1719_v3  ;;  %v1712_v14 = vrot.slane %v1682_v63, 3  ;;  %v1692_v17 = vrot.slane %v1682_v63, 7 }
 0x37e   : > { %v2276_v24 = vpop.f32.mrb[42].mxu0  ;;  %v1704_v37 = vsel %vm1693_vm8, %v1703_v12, %v1702_v1  ;;  %v1656_v38 = vmax.f32 %v1627_v25, %v1638_v40  ;;  %v1742_v39 = vsel %vm1693_vm8, %v1741_v44, %v1740_v11  ;;  %v1553_v43 = vmax.f32 %v1527_v32, 0.0 }
 0x37f   : > { %v1537_v36 = vadd.f32 %v2276_v24, %v3148_v18  ;;  %v1531_v15 = vpop.f32.mrb[43].mxu0  ;;  %v1655_v42 = vmax.f32 %v1626_v33, %v1639_v54  ;;  %v1713_v16 = vsel %vm1693_vm8, %v1712_v14, %v1711_v5  ;;  %v1733_v49 = vrot.slane %v1683_v10, 7 }
 0x380   : > { %v1532_v41 = vadd.f32 %v3148_v18, %v1531_v15  ;;  %v1685_v48 = vmax.f32 %v1656_v38, %v1667_v47  ;;  %v1552_v50 = vmax.f32 %v1522_v13, 0.0  ;;  %v1694_v29 = vsel %vm1693_vm8, %v1692_v17, %v3177_v20 }
 0x381   : > { %v1555_v46 = vmax.f32 %v1537_v36, 0.0  ;;  %v1684_v19 = vmax.f32 %v1655_v42, %v1668_v61  ;;  %v1734_v18 = vsel %vm1693_vm8, %v1733_v49, %v1681_v4 }
 0x382   : > { %v1554_v51 = vmax.f32 %v1532_v41, 0.0  ;;  %v1735_v53 = vrot.slane %v1685_v48, 6  ;;  %v1743_v55 = vsel %vm1696_vm9, %v1685_v48, %v1742_v39 }
 0x383   : > { %v1563_v52 = vmax.f32 %v1553_v43, %v1555_v46  ;;  %v1722_v56 = vrot.slane %v1684_v19, 4  ;;  %v1705_v57 = vsel %vm1696_vm9, %v1684_v19, %v1704_v37  ;;  %v1714_v59 = vrot.slane %v1684_v19, 2 }
 0x384   : > { %v1562_v21 = vmax.f32 %v1552_v50, %v1554_v51  ;;  %v1695_v58 = vrot.slane %v1684_v19, 6  ;;  %v1736_v27 = vsel %vm1696_vm9, %v1735_v53, %v1734_v18 }
 0x385   : > { %v1583_v6 = vrot.slane %v1563_v52, 1  ;;  %v1612_v60 = vrot.slane %v1563_v52, 2  ;;  %v1641_v0 = vrot.slane %v1563_v52, 3  ;;  %v1670_v2 = vrot.slane %v1563_v52, 4 }
 0x386   : > { %v1582_v7 = vrot.slane %v1562_v21, 1  ;;  %v1611_v3 = vrot.slane %v1562_v21, 2  ;;  %v1640_v30 = vrot.slane %v1562_v21, 3  ;;  %v1669_v34 = vrot.slane %v1562_v21, 4 }
 0x387   : > { %v1723_v20 = vsel %vm1696_vm9, %v1722_v56, %v1721_v26  ;;  %v1600_v40 = vmax.f32 %v1563_v52, %v1583_v6  ;;  %v1715_v47 = vsel %vm1696_vm9, %v1714_v59, %v1713_v16  ;;  %v1697_v1 = vsel %vm1696_vm9, %v1695_v58, %v1694_v29 }
 0x388   : > { %v1584_v4 = vsel %vm1572_vm4, %v1582_v7, %v1583_v6  ;;  %v1613_v22 = vsel %vm1601_vm5, %v1611_v3, %v1612_v60  ;;  %v1642_v9 = vsel %vm1630_vm6, %v1640_v30, %v1641_v0  ;;  %v1671_v23 = vsel %vm1659_vm7, %v1669_v34, %v1670_v2 }
 0x389   : > { %v1599_v62 = vmax.f32 %v1562_v21, %v1584_v4  ;;  %v1629_v63 = vmax.f32 %v1600_v40, %v1612_v60 }
 0x38b   : > { %v1628_v10 = vmax.f32 %v1599_v62, %v1613_v22  ;;  %v1658_v35 = vmax.f32 %v1629_v63, %v1641_v0 }
 0x38d   : > { %v1657_v45 = vmax.f32 %v1628_v10, %v1642_v9  ;;  %v1687_v8 = vmax.f32 %v1658_v35, %v1670_v2 }
 0x38f   : > { %v1686_v54 = vmax.f32 %v1657_v45, %v1671_v23  ;;  %v1744_v11 = vrot.slane %v1687_v8, 7  ;;  %v1737_v28 = vrot.slane %v1687_v8, 5 }
 0x391   : > { %v1724_v61 = vrot.slane %v1686_v54, 3  ;;  %v1706_v31 = vrot.slane %v1686_v54, 7  ;;  %v1745_v5 = vsel %vm1699_vm10, %v1744_v11, %v1743_v55  ;;  %v1716_v32 = vrot.slane %v1686_v54, 1 }
 0x392   : > { %v1698_v12 = vrot.slane %v1686_v54, 5  ;;  %v1738_v25 = vsel %vm1699_vm10, %v1737_v28, %v1736_v27 }
 0x393   : > { %v1725_v44 = vsel %vm1699_vm10, %v1724_v61, %v1723_v20  ;;  %v1707_v33 = vsel %vm1699_vm10, %v1706_v31, %v1705_v57  ;;  %v1717_v13 = vsel %vm1699_vm10, %v1716_v32, %v1715_v47 }
 0x394   : > { %1726 = vrot.lane.b32.xlu1 %v1725_v44, %s2519_s21  ;;  %1708 = vrot.lane.b32.xlu0 %v1707_v33, %s2519_s21  ;;  %v1700_v24 = vsel %vm1699_vm10, %v1698_v12, %v1697_v1 }
 0x398   : > { %1746 = vrot.lane.b32.xlu0 %v1745_v5, %s2519_s21  ;;  %s2453_s21 = scalar_lea.vmem %s3219_s23, 192 }
 0x399   : > { %p2454_p11 = scmp.ne.s32.totalorder %s3219_s23, %s2453_s21  ;;  %p2461_p1 = scmp.lt.s32.totalorder %s2459_s15, %s2453_s21 }
 0x39b   : > { %p2455_p12 = pnand %p2454_p11, %p2599_p5  ;;  %p2462_p2 = por %p2461_p1, %p2460_p0 }
 0x39d   : > { %p2456_p13 = pneg %p2455_p12 }
 0x39f   : > { %p2463_p3 = pnand %p2462_p2, %p2456_p13 }
 0x406   : > { %v1727_v26 = vpop.permute.xlu1 %1726  ;;  %v1709_v14 = vpop.permute.xlu0 %1708 }
 0x407   : > { %v1750_v36 = vsel %vm723_vm2, %v1717_v13, %v1727_v26  ;;  %v1749_v15 = vsel %vm723_vm2, %v1700_v24, %v1709_v14 }
 0x408   : > { %v1754_v37 = vcombine.low %v1749_v15, %v1750_v36 }
 0x40a   : > { %1756 = vst [vmem:[%s271_s22] sm:$0xff] %v1754_v37  ;;  %v1747_v38 = vpop.permute.xlu0 %1746 }
 0x40b   : > { %v1751_v39 = vsel %vm723_vm2, %v1738_v25, %v1747_v38 }
 0x40c   : > { %1757 = vst [vmem:[%s271_s22 + $0x8] sm:$0xf] %v1751_v39 }
 0x40d   : > { %2466 = shalt.err (!%p2463_p3)
}
 0x40e   : > { %s2467_s16 = scalar_lea.hbm %s3217_s9, 192  ;;  %s2471_s19 = scalar_lea.hbm %s3267_s7, 384 }
 0x40f   : > { %p2468_p4 = scmp.ne.s32.totalorder %s3217_s9, %s2467_s16  ;;  %p2472_p9 = scmp.lt.u32.totalorder %s3217_s9, %s3267_s7 }
 0x410   : > { %p2473_p10 = scmp.lt.u32.totalorder %s2471_s19, %s2467_s16  ;;  %p2475_p12 = scmp.lt.u32.totalorder %s2467_s16, %s3217_s9 }
 0x411   : > { %p2469_p7 = pnand %p2468_p4, %p2599_p5 }
 0x412   : > { %p2474_p11 = por %p2473_p10, %p2472_p9 }
 0x413   : > { %p2470_p8 = pneg %p2469_p7 }
 0x414   : > { %p2476_p13 = por %p2475_p12, %p2474_p11 }
 0x416   : > { %p2477_p0 = pnand %p2476_p13, %p2470_p8 }
 0x418   : > { %2480 = shalt.err (!%p2477_p0)
}
 0x419   : > { %2411 = dma.vmem_to_hbm [thread:$0]  (%p2599_p5), %s3219_s23, 192, %s3217_s9, %s1759_s28  }
 0x41a PF: > { %p2417_p1 = scmp.ge.s32.totalorder %s2515_s27, 2  ;;  %s1785_s29 = sand.u32 1, %s2503_s24  }
 0x41b   : > { %s1786_s8 = scalar_lea.sflag [#allocation4], %s1785_s29 }
 0x41c   : > { %p2414_p2 = pnand %p2417_p1, %p2603_p6 }
 0x41e   : > { %2498 = dma.done.wait (!%p2414_p2), %s1786_s8, 192  }
 0x41f   : > { %2500 = vsyncadd (!%p2414_p2), %s1786_s8, 4294967104  ;;  %p17_p3 = scmp.ge.s32.totalorder %s2586_s30, 4   ;;  %s3270_s24 = smov %s2507_s25 }
 0x420   : > { %s3271_s25 = smov %s2511_s26  ;;  %s3272_s26 = smov %s2597_s10 }
 0x421   : > { %s3273_s27 = smov %s2586_s30  ;;  %19 = sbr.rel (!%p17_p3) target bundleno = 3 (0x3), region = 85 }
 0x428   :  { %1791 = vsyncpa [#allocation4], 1 }
 0x429   :  { %1793 = vsyncpa [#allocation4 + $0x1], 1 }

</bundles_post_ra>
